<compile_context>
chip_gen: v6e
topology: v6e:2x2x1
jax: 0.10.0
libtpu: 0.0.40
codegen_flags: <defaults>
</compile_context>

<pallas_src>
import functools

import jax
import jax.numpy as jnp
from jax.experimental import pallas as pl
from jax.experimental.pallas import tpu as pltpu


_INV_SQRT2 = 0.7071067811865476
_SQRT_2_OVER_PI = 0.7978845608028654
_GELU_C = 0.044715


def _gelu_exact(x):
    # PyTorch nn.GELU() default = exact erf GELU (used only in the reference).
    return 0.5 * x * (1.0 + jax.lax.erf(x * _INV_SQRT2))


def _gelu_tanh(x):
    # tanh-approximate GELU: tanh runs on the EUP slot instead of a ~20-op VPU
    # erf polynomial. Approximation error << the bf16-matmul tolerance.
    x3 = x * x * x
    return 0.5 * x * (1.0 + jnp.tanh(_SQRT_2_OVER_PI * (x + _GELU_C * x3)))


def mlp_kernel(x_ref, w1_ref, b1_ref, ln_w_ref, ln_b_ref,
               w2_ref, b2_ref, w3_ref, b3_ref, o_ref, *, eltwise_dtype):
    f32 = jnp.float32

    # x.clamp(0, 1)
    x = jnp.clip(x_ref[...], 0.0, 1.0)                         # (TM, K_in) f32

    # encoder Linear(input_dim, hidden): K_in is tiny (4), so use a VPU
    # broadcast-FMA chain instead of a >95%-padded MXU dot.
    w1 = w1_ref[...]                                            # (K_in, H) f32
    h = x[:, 0:1] * w1[0:1, :] + b1_ref[...]                    # (TM, H) f32
    for k in range(1, w1.shape[0]):                             # static K_in-1 iters
        h = h + x[:, k:k + 1] * w1[k:k + 1, :]

    # encoder LayerNorm(hidden), eps=1e-5, affine — fused single-pass statistics (f32).
    inv_h = 1.0 / h.shape[-1]
    s1 = jnp.sum(h, axis=-1, keepdims=True)
    s2 = jnp.sum(h * h, axis=-1, keepdims=True)
    mean = s1 * inv_h
    var = jnp.maximum(s2 * inv_h - mean * mean, 0.0)
    h = (h - mean) * jax.lax.rsqrt(var + 1e-5)
    h = h * ln_w_ref[...] + ln_b_ref[...]

    # encoder GELU (tanh approx); eltwise_dtype = bf16 on v6e/v7x, f32 on v5e.
    h_act = _gelu_tanh(h.astype(eltwise_dtype))
    h_res = h_act.astype(f32)                                   # residual kept in f32

    # transformer: Linear(hidden, hidden) -> GELU -> Dropout(0.2), plus residual.
    # bf16 MXU inputs, f32 accumulation.
    # TODO(synk): Dropout(0.2) is identity in eval mode; training-mode RNG masking not implemented.
    t = jnp.dot(h_act.astype(jnp.bfloat16), w2_ref[...],
                preferred_element_type=f32) + b2_ref[...]
    t = _gelu_tanh(t.astype(eltwise_dtype)).astype(f32)
    h2 = h_res + t                                              # (TM, H) f32

    # decoder Linear(hidden, output_dim) with GamutProjection pre-folded into the
    # (lane-padded) weights, then sigmoid.  The module's final .clamp(0,1) is
    # redundant after sigmoid (output already in (0,1)) -> dropped.
    y = jnp.dot(h2.astype(jnp.bfloat16), w3_ref[...],
                preferred_element_type=f32) + b3_ref[...]
    y = jax.nn.sigmoid(y.astype(eltwise_dtype))
    o_ref[...] = y.astype(o_ref.dtype)


def _round_up(v, m):
    return (v + m - 1) // m * m


def _eltwise_dtype():
    # v5e (and earlier) VPU/EUP have no native bf16 -> keep elementwise math f32
    # there; v6e/v7x get packed bf16 elementwise at ~2x throughput.
    try:
        kind = jax.devices()[0].device_kind.lower()
    except Exception:
        return jnp.float32
    if any(v in kind for v in ("v2", "v3", "v4", "v5")):
        return jnp.float32
    return jnp.bfloat16


def _pick_tm(batch):
    # Big tiles amortize the ~0.35us per-grid-step overhead; cap at 1024 so the
    # ~14 KB/row of intermediates stays well inside v7x's 64 MiB VMEM.
    tm = min(1024, _round_up(batch, 16))
    # v7x has 2 TensorCores: ensure the "parallel" batch axis has >=2 grid steps
    # once each half-tile is still large enough to amortize step overhead.
    if batch >= 512:
        tm = min(tm, _round_up((batch + 1) // 2, 16))
    return tm


def prepare_params(params):
    """One-time parameter preprocessing (hoisted out of the per-call jit path):
    GamutProjection fold, lane padding to 128, bf16 weight casts."""
    w1, b1, ln_w, ln_b, w2, b2, w3, b3, proj = params
    out_dim = int(w3.shape[1])

    # sigmoid directly follows the proj matmul, so
    # (h @ w3 + b3) @ proj == h @ (w3 @ proj) + (b3 @ proj).
    w3p = w3 @ proj
    b3p = b3 @ proj

    # Lane-dense padded output width (multiple of 128) -> unmasked vector stores.
    out_pad = _round_up(out_dim, 128)
    w3p = jnp.pad(w3p, ((0, 0), (0, out_pad - out_dim)))
    b3p = jnp.pad(b3p, ((0, 0), (0, out_pad - out_dim)))

    # bf16 inputs for the hidden-size MXU matmuls (accumulation stays f32).
    w2_bf = w2.astype(jnp.bfloat16)
    w3p_bf = w3p.astype(jnp.bfloat16)

    arrays = (w1, b1, ln_w, ln_b, w2_bf, b2, w3p_bf, b3p)
    return arrays, out_dim


@functools.partial(jax.jit, static_argnames=("out_dim",))
def _mlp_forward_impl(x, prepared_arrays, out_dim):
    w1, b1, ln_w, ln_b, w2_bf, b2, w3p_bf, b3p = prepared_arrays
    batch, in_dim = x.shape
    out_pad = w3p_bf.shape[1]

    tm = _pick_tm(batch)
    b_pad = _round_up(batch, tm)
    x_p = jnp.pad(x, ((0, b_pad - batch), (0, 0)))
    grid = (b_pad // tm,)

    def resident(shape):
        # Constant block index -> operand stays VMEM-resident across grid steps.
        return pl.BlockSpec(shape, lambda i, _n=len(shape): (0,) * _n)

    kernel = functools.partial(mlp_kernel, eltwise_dtype=_eltwise_dtype())

    out = pl.pallas_call(
        kernel,
        out_shape=jax.ShapeDtypeStruct((b_pad, out_pad), jnp.bfloat16),
        grid=grid,
        in_specs=[
            pl.BlockSpec((tm, in_dim), lambda i: (i, 0)),       # x row-tile
            resident(w1.shape), resident(b1.shape),
            resident(ln_w.shape), resident(ln_b.shape),
            resident(w2_bf.shape), resident(b2.shape),
            resident(w3p_bf.shape), resident(b3p.shape),
        ],
        out_specs=pl.BlockSpec((tm, out_pad), lambda i: (i, 0)),
        compiler_params=pltpu.CompilerParams(
            dimension_semantics=("parallel",),
            vmem_limit_bytes=48 * 1024 * 1024),
    )(x_p, w1, b1, ln_w, ln_b, w2_bf, b2, w3p_bf, b3p)

    # bf16 slab -> upcast only the real lanes (half the padded HBM writeback of f32).
    return out[:batch, :out_dim].astype(jnp.float32)


def mlp_forward(x, prepared_params):
    arrays, out_dim = prepared_params
    return _mlp_forward_impl(x, arrays, out_dim)


def init_params(key, input_dim=4, output_dim=5, hidden_dim=512):
    k1, k2, k3 = jax.random.split(key, 3)

    def linear_init(k, fan_in, fan_out):
        # uniform(-1/sqrt(fan_in), 1/sqrt(fan_in)), like torch nn.Linear defaults
        bound = 1.0 / jnp.sqrt(fan_in)
        kw, kb = jax.random.split(k)
        w = jax.random.uniform(kw, (fan_in, fan_out), jnp.float32, -bound, bound)
        b = jax.random.uniform(kb, (1, fan_out), jnp.float32, -bound, bound)
        return w, b

    w1, b1 = linear_init(k1, input_dim, hidden_dim)
    w2, b2 = linear_init(k2, hidden_dim, hidden_dim)
    w3, b3 = linear_init(k3, hidden_dim, output_dim)
    ln_w = jnp.ones((1, hidden_dim), jnp.float32)
    ln_b = jnp.zeros((1, hidden_dim), jnp.float32)
    proj = jnp.eye(output_dim, dtype=jnp.float32)   # GamutProjection init = identity
    return (w1, b1, ln_w, ln_b, w2, b2, w3, b3, proj)


def reference_forward(x, params):
    # Pure-JAX f32 reference mirroring the PyTorch forward (eval mode, exact erf GELU).
    w1, b1, ln_w, ln_b, w2, b2, w3, b3, proj = params
    x = jnp.clip(x, 0.0, 1.0)
    h = x @ w1 + b1
    mean = h.mean(-1, keepdims=True)
    var = ((h - mean) ** 2).mean(-1, keepdims=True)
    h = (h - mean) / jnp.sqrt(var + 1e-5) * ln_w + ln_b
    h = _gelu_exact(h)
    t = _gelu_exact(h @ w2 + b2)
    h = t + h
    y = h @ w3 + b3
    y = jax.nn.sigmoid(y @ proj)
    return jnp.clip(y, 0.0, 1.0)


if __name__ == "__main__":
    key = jax.random.PRNGKey(0)
    kx, kp = jax.random.split(key)

    batch, input_dim, output_dim, hidden_dim = 8, 4, 5, 512
    x = jax.random.uniform(kx, (batch, input_dim), jnp.float32, -0.2, 1.2)
    params = init_params(kp, input_dim, output_dim, hidden_dim)

    prepared = prepare_params(params)              # one-time preprocessing
    out = jax.block_until_ready(mlp_forward(x, prepared))

    ref = reference_forward(x, params)
    assert out.shape == (batch, output_dim)
    # bf16 MXU inputs + tanh GELU + bf16 output slab (deliberate perf trade-offs)
    # -> loosened tolerance vs the f32/erf reference.
    assert jnp.allclose(out, ref, atol=2e-2, rtol=0.0), "mismatch vs f32 reference"
    print("KERNEL_OK")
</pallas_src>

<mosaic_0001>
module attributes {stable_mosaic.version = 11 : i64} {
  func.func @mlp_kernel(%arg0: i32, %arg1: memref<16x4xf32, #tpu.memory_space<vmem>>, %arg2: memref<4x512xf32, #tpu.memory_space<vmem>>, %arg3: memref<1x512xf32, #tpu.memory_space<vmem>>, %arg4: memref<1x512xf32, #tpu.memory_space<vmem>>, %arg5: memref<1x512xf32, #tpu.memory_space<vmem>>, %arg6: memref<512x512xbf16, #tpu.memory_space<vmem>>, %arg7: memref<1x512xf32, #tpu.memory_space<vmem>>, %arg8: memref<512x128xbf16, #tpu.memory_space<vmem>>, %arg9: memref<1x128xf32, #tpu.memory_space<vmem>>, %arg10: memref<16x128xbf16, #tpu.memory_space<vmem>>) attributes {dimension_semantics = [#tpu.dimension_semantics<parallel>], iteration_bounds = array<i64: 1>, scalar_prefetch = 0 : i64, scratch_operands = 0 : i64, tpu.core_type = #tpu.core_type<tc>, window_params = [{transform_indices = @transform_0, window_bounds = array<i64: 16, 4>}, {pipeline_mode = #tpu.pipeline_mode<synchronous>, transform_indices = @transform_1, window_bounds = array<i64: 4, 512>}, {pipeline_mode = #tpu.pipeline_mode<synchronous>, transform_indices = @transform_2, window_bounds = array<i64: 1, 512>}, {pipeline_mode = #tpu.pipeline_mode<synchronous>, transform_indices = @transform_3, window_bounds = array<i64: 1, 512>}, {pipeline_mode = #tpu.pipeline_mode<synchronous>, transform_indices = @transform_4, window_bounds = array<i64: 1, 512>}, {pipeline_mode = #tpu.pipeline_mode<synchronous>, transform_indices = @transform_5, window_bounds = array<i64: 512, 512>}, {pipeline_mode = #tpu.pipeline_mode<synchronous>, transform_indices = @transform_6, window_bounds = array<i64: 1, 512>}, {pipeline_mode = #tpu.pipeline_mode<synchronous>, transform_indices = @transform_7, window_bounds = array<i64: 512, 128>}, {pipeline_mode = #tpu.pipeline_mode<synchronous>, transform_indices = @transform_8, window_bounds = array<i64: 1, 128>}, {transform_indices = @transform_9, window_bounds = array<i64: 16, 128>}]} {
    %c0 = arith.constant 0 : index
    %c0_0 = arith.constant 0 : index
    %0 = vector.load %arg1[%c0, %c0_0] : memref<16x4xf32, #tpu.memory_space<vmem>>, vector<16x4xf32>
    %cst = arith.constant 0.000000e+00 : f32
    %cst_1 = arith.constant 1.000000e+00 : f32
    %1 = vector.broadcast %cst : f32 to vector<16x4xf32>
    %2 = arith.maximumf %1, %0 : vector<16x4xf32>
    %3 = vector.broadcast %cst_1 : f32 to vector<16x4xf32>
    %4 = arith.minimumf %3, %2 : vector<16x4xf32>
    %c0_2 = arith.constant 0 : index
    %c0_3 = arith.constant 0 : index
    %5 = vector.load %arg2[%c0_2, %c0_3] : memref<4x512xf32, #tpu.memory_space<vmem>>, vector<4x512xf32>
    %6 = vector.extract_strided_slice %4 {offsets = [0, 0], sizes = [16, 1], strides = [1, 1]} : vector<16x4xf32> to vector<16x1xf32>
    %7 = vector.extract_strided_slice %5 {offsets = [0, 0], sizes = [1, 512], strides = [1, 1]} : vector<4x512xf32> to vector<1x512xf32>
    %8 = vector.broadcast %6 : vector<16x1xf32> to vector<16x512xf32>
    %9 = vector.broadcast %7 : vector<1x512xf32> to vector<16x512xf32>
    %10 = arith.mulf %8, %9 : vector<16x512xf32>
    %c0_4 = arith.constant 0 : index
    %c0_5 = arith.constant 0 : index
    %11 = vector.load %arg3[%c0_4, %c0_5] : memref<1x512xf32, #tpu.memory_space<vmem>>, vector<1x512xf32>
    %12 = vector.broadcast %11 : vector<1x512xf32> to vector<16x512xf32>
    %13 = arith.addf %10, %12 : vector<16x512xf32>
    %14 = vector.extract_strided_slice %4 {offsets = [0, 1], sizes = [16, 1], strides = [1, 1]} : vector<16x4xf32> to vector<16x1xf32>
    %15 = vector.extract_strided_slice %5 {offsets = [1, 0], sizes = [1, 512], strides = [1, 1]} : vector<4x512xf32> to vector<1x512xf32>
    %16 = vector.broadcast %14 : vector<16x1xf32> to vector<16x512xf32>
    %17 = vector.broadcast %15 : vector<1x512xf32> to vector<16x512xf32>
    %18 = arith.mulf %16, %17 : vector<16x512xf32>
    %19 = arith.addf %13, %18 : vector<16x512xf32>
    %20 = vector.extract_strided_slice %4 {offsets = [0, 2], sizes = [16, 1], strides = [1, 1]} : vector<16x4xf32> to vector<16x1xf32>
    %21 = vector.extract_strided_slice %5 {offsets = [2, 0], sizes = [1, 512], strides = [1, 1]} : vector<4x512xf32> to vector<1x512xf32>
    %22 = vector.broadcast %20 : vector<16x1xf32> to vector<16x512xf32>
    %23 = vector.broadcast %21 : vector<1x512xf32> to vector<16x512xf32>
    %24 = arith.mulf %22, %23 : vector<16x512xf32>
    %25 = arith.addf %19, %24 : vector<16x512xf32>
    %26 = vector.extract_strided_slice %4 {offsets = [0, 3], sizes = [16, 1], strides = [1, 1]} : vector<16x4xf32> to vector<16x1xf32>
    %27 = vector.extract_strided_slice %5 {offsets = [3, 0], sizes = [1, 512], strides = [1, 1]} : vector<4x512xf32> to vector<1x512xf32>
    %28 = vector.broadcast %26 : vector<16x1xf32> to vector<16x512xf32>
    %29 = vector.broadcast %27 : vector<1x512xf32> to vector<16x512xf32>
    %30 = arith.mulf %28, %29 : vector<16x512xf32>
    %31 = arith.addf %25, %30 : vector<16x512xf32>
    %cst_6 = arith.constant dense<0.000000e+00> : vector<16xf32>
    %32 = vector.multi_reduction <add>, %31, %cst_6 [1] : vector<16x512xf32> to vector<16xf32>
    %33 = vector.shape_cast %32 : vector<16xf32> to vector<16x1xf32>
    %34 = arith.mulf %31, %31 : vector<16x512xf32>
    %cst_7 = arith.constant dense<0.000000e+00> : vector<16xf32>
    %35 = vector.multi_reduction <add>, %34, %cst_7 [1] : vector<16x512xf32> to vector<16xf32>
    %36 = vector.shape_cast %35 : vector<16xf32> to vector<16x1xf32>
    %cst_8 = arith.constant 0.001953125 : f32
    %37 = vector.broadcast %cst_8 : f32 to vector<16x1xf32>
    %38 = arith.mulf %33, %37 : vector<16x1xf32>
    %cst_9 = arith.constant 0.001953125 : f32
    %39 = vector.broadcast %cst_9 : f32 to vector<16x1xf32>
    %40 = arith.mulf %36, %39 : vector<16x1xf32>
    %41 = arith.mulf %38, %38 : vector<16x1xf32>
    %42 = arith.subf %40, %41 : vector<16x1xf32>
    %cst_10 = arith.constant 0.000000e+00 : f32
    %43 = vector.broadcast %cst_10 : f32 to vector<16x1xf32>
    %44 = arith.maximumf %42, %43 : vector<16x1xf32>
    %45 = vector.broadcast %38 : vector<16x1xf32> to vector<16x512xf32>
    %46 = arith.subf %31, %45 : vector<16x512xf32>
    %cst_11 = arith.constant 9.99999974E-6 : f32
    %47 = vector.broadcast %cst_11 : f32 to vector<16x1xf32>
    %48 = arith.addf %44, %47 : vector<16x1xf32>
    %49 = math.rsqrt %48 : vector<16x1xf32>
    %50 = vector.broadcast %49 : vector<16x1xf32> to vector<16x512xf32>
    %51 = arith.mulf %46, %50 : vector<16x512xf32>
    %c0_12 = arith.constant 0 : index
    %c0_13 = arith.constant 0 : index
    %52 = vector.load %arg4[%c0_12, %c0_13] : memref<1x512xf32, #tpu.memory_space<vmem>>, vector<1x512xf32>
    %53 = vector.broadcast %52 : vector<1x512xf32> to vector<16x512xf32>
    %54 = arith.mulf %51, %53 : vector<16x512xf32>
    %c0_14 = arith.constant 0 : index
    %c0_15 = arith.constant 0 : index
    %55 = vector.load %arg5[%c0_14, %c0_15] : memref<1x512xf32, #tpu.memory_space<vmem>>, vector<1x512xf32>
    %56 = vector.broadcast %55 : vector<1x512xf32> to vector<16x512xf32>
    %57 = arith.addf %54, %56 : vector<16x512xf32>
    %58 = arith.truncf %57 : vector<16x512xf32> to vector<16x512xbf16>
    %59 = arith.mulf %58, %58 : vector<16x512xbf16>
    %60 = arith.mulf %59, %58 : vector<16x512xbf16>
    %cst_16 = arith.constant 5.000000e-01 : bf16
    %61 = vector.broadcast %cst_16 : bf16 to vector<16x512xbf16>
    %62 = arith.mulf %61, %58 : vector<16x512xbf16>
    %cst_17 = arith.constant 4.467770e-02 : bf16
    %63 = vector.broadcast %cst_17 : bf16 to vector<16x512xbf16>
    %64 = arith.mulf %63, %60 : vector<16x512xbf16>
    %65 = arith.addf %58, %64 : vector<16x512xbf16>
    %cst_18 = arith.constant 7.968750e-01 : bf16
    %66 = vector.broadcast %cst_18 : bf16 to vector<16x512xbf16>
    %67 = arith.mulf %66, %65 : vector<16x512xbf16>
    %68 = math.tanh %67 : vector<16x512xbf16>
    %cst_19 = arith.constant 1.000000e+00 : bf16
    %69 = vector.broadcast %cst_19 : bf16 to vector<16x512xbf16>
    %70 = arith.addf %69, %68 : vector<16x512xbf16>
    %71 = arith.mulf %62, %70 : vector<16x512xbf16>
    %72 = arith.extf %71 : vector<16x512xbf16> to vector<16x512xf32>
    %c0_20 = arith.constant 0 : index
    %c0_21 = arith.constant 0 : index
    %73 = vector.load %arg6[%c0_20, %c0_21] : memref<512x512xbf16, #tpu.memory_space<vmem>>, vector<512x512xbf16>
    %cst_22 = arith.constant dense<0.000000e+00> : vector<16x512xf32>
    %74 = tpu.matmul %71, %73, %cst_22 {dimension_numbers = #tpu.dot_dimension_numbers<[1], [0], [0], [1], [0, 0, 1, 1], [], []>} : vector<16x512xbf16>, vector<512x512xbf16>, vector<16x512xf32> -> vector<16x512xf32>
    %c0_23 = arith.constant 0 : index
    %c0_24 = arith.constant 0 : index
    %75 = vector.load %arg7[%c0_23, %c0_24] : memref<1x512xf32, #tpu.memory_space<vmem>>, vector<1x512xf32>
    %76 = vector.broadcast %75 : vector<1x512xf32> to vector<16x512xf32>
    %77 = arith.addf %74, %76 : vector<16x512xf32>
    %78 = arith.truncf %77 : vector<16x512xf32> to vector<16x512xbf16>
    %79 = arith.mulf %78, %78 : vector<16x512xbf16>
    %80 = arith.mulf %79, %78 : vector<16x512xbf16>
    %cst_25 = arith.constant 5.000000e-01 : bf16
    %81 = vector.broadcast %cst_25 : bf16 to vector<16x512xbf16>
    %82 = arith.mulf %81, %78 : vector<16x512xbf16>
    %cst_26 = arith.constant 4.467770e-02 : bf16
    %83 = vector.broadcast %cst_26 : bf16 to vector<16x512xbf16>
    %84 = arith.mulf %83, %80 : vector<16x512xbf16>
    %85 = arith.addf %78, %84 : vector<16x512xbf16>
    %cst_27 = arith.constant 7.968750e-01 : bf16
    %86 = vector.broadcast %cst_27 : bf16 to vector<16x512xbf16>
    %87 = arith.mulf %86, %85 : vector<16x512xbf16>
    %88 = math.tanh %87 : vector<16x512xbf16>
    %cst_28 = arith.constant 1.000000e+00 : bf16
    %89 = vector.broadcast %cst_28 : bf16 to vector<16x512xbf16>
    %90 = arith.addf %89, %88 : vector<16x512xbf16>
    %91 = arith.mulf %82, %90 : vector<16x512xbf16>
    %92 = arith.extf %91 : vector<16x512xbf16> to vector<16x512xf32>
    %93 = arith.addf %72, %92 : vector<16x512xf32>
    %94 = arith.truncf %93 : vector<16x512xf32> to vector<16x512xbf16>
    %c0_29 = arith.constant 0 : index
    %c0_30 = arith.constant 0 : index
    %95 = vector.load %arg8[%c0_29, %c0_30] : memref<512x128xbf16, #tpu.memory_space<vmem>>, vector<512x128xbf16>
    %cst_31 = arith.constant dense<0.000000e+00> : vector<16x128xf32>
    %96 = tpu.matmul %94, %95, %cst_31 {dimension_numbers = #tpu.dot_dimension_numbers<[1], [0], [0], [1], [0, 0, 1, 1], [], []>} : vector<16x512xbf16>, vector<512x128xbf16>, vector<16x128xf32> -> vector<16x128xf32>
    %c0_32 = arith.constant 0 : index
    %c0_33 = arith.constant 0 : index
    %97 = vector.load %arg9[%c0_32, %c0_33] : memref<1x128xf32, #tpu.memory_space<vmem>>, vector<1x128xf32>
    %98 = vector.broadcast %97 : vector<1x128xf32> to vector<16x128xf32>
    %99 = arith.addf %96, %98 : vector<16x128xf32>
    %100 = arith.truncf %99 : vector<16x128xf32> to vector<16x128xbf16>
    %101 = arith.negf %100 : vector<16x128xbf16>
    %102 = math.exp %101 : vector<16x128xbf16>
    %cst_34 = arith.constant 1.000000e+00 : bf16
    %103 = vector.broadcast %cst_34 : bf16 to vector<16x128xbf16>
    %104 = arith.addf %103, %102 : vector<16x128xbf16>
    %105 = arith.divf %103, %104 : vector<16x128xbf16>
    %c0_35 = arith.constant 0 : index
    %c0_36 = arith.constant 0 : index
    %106 = vector.load %arg10[%c0_35, %c0_36] : memref<16x128xbf16, #tpu.memory_space<vmem>>, vector<16x128xbf16>
    tpu.vector_store %arg10[%c0_35, %c0_36], %105 {strides = array<i32>} : memref<16x128xbf16, #tpu.memory_space<vmem>>, vector<16x128xbf16>,
    return
  }
  func.func @transform_0(%arg0: i32) -> (i32, i32) {
    %c0_i32 = arith.constant 0 : i32
    %c0_i32_0 = arith.constant 0 : i32
    return %arg0, %c0_i32 : i32, i32
  }
  func.func @transform_1(%arg0: i32) -> (i32, i32) {
    %c0_i32 = arith.constant 0 : i32
    %c0_i32_0 = arith.constant 0 : i32
    %c0_i32_1 = arith.constant 0 : i32
    return %c0_i32, %c0_i32_0 : i32, i32
  }
  func.func @transform_2(%arg0: i32) -> (i32, i32) {
    %c0_i32 = arith.constant 0 : i32
    %c0_i32_0 = arith.constant 0 : i32
    %c0_i32_1 = arith.constant 0 : i32
    return %c0_i32, %c0_i32_0 : i32, i32
  }
  func.func @transform_3(%arg0: i32) -> (i32, i32) {
    %c0_i32 = arith.constant 0 : i32
    %c0_i32_0 = arith.constant 0 : i32
    %c0_i32_1 = arith.constant 0 : i32
    return %c0_i32, %c0_i32_0 : i32, i32
  }
  func.func @transform_4(%arg0: i32) -> (i32, i32) {
    %c0_i32 = arith.constant 0 : i32
    %c0_i32_0 = arith.constant 0 : i32
    %c0_i32_1 = arith.constant 0 : i32
    return %c0_i32, %c0_i32_0 : i32, i32
  }
  func.func @transform_5(%arg0: i32) -> (i32, i32) {
    %c0_i32 = arith.constant 0 : i32
    %c0_i32_0 = arith.constant 0 : i32
    %c0_i32_1 = arith.constant 0 : i32
    return %c0_i32, %c0_i32_0 : i32, i32
  }
  func.func @transform_6(%arg0: i32) -> (i32, i32) {
    %c0_i32 = arith.constant 0 : i32
    %c0_i32_0 = arith.constant 0 : i32
    %c0_i32_1 = arith.constant 0 : i32
    return %c0_i32, %c0_i32_0 : i32, i32
  }
  func.func @transform_7(%arg0: i32) -> (i32, i32) {
    %c0_i32 = arith.constant 0 : i32
    %c0_i32_0 = arith.constant 0 : i32
    %c0_i32_1 = arith.constant 0 : i32
    return %c0_i32, %c0_i32_0 : i32, i32
  }
  func.func @transform_8(%arg0: i32) -> (i32, i32) {
    %c0_i32 = arith.constant 0 : i32
    %c0_i32_0 = arith.constant 0 : i32
    %c0_i32_1 = arith.constant 0 : i32
    return %c0_i32, %c0_i32_0 : i32, i32
  }
  func.func @transform_9(%arg0: i32) -> (i32, i32) {
    %c0_i32 = arith.constant 0 : i32
    %c0_i32_0 = arith.constant 0 : i32
    return %arg0, %c0_i32 : i32, i32
  }
}

</mosaic_0001>

<bundles_post_ra>
// kernel: _mlp_forward_impl.1
= control target key start
LH: loop header
LB: loop body
LE: loop exit
PB: predicated region body
PF: predicated region fallthrough
CT: control target
= control target key end

     0   :  { %14 = vsyncpa [#allocation3], 0  ;;  %s2630_s0 = inlined_call_operand.vmem [shape: f32[16,4], index: 0, kind: input, shape index: {}]   ;;  %s2631_s1 = inlined_call_operand.vmem [shape: f32[4,512], index: 1, kind: input, shape index: {}]   ;;  %s2632_s2 = inlined_call_operand.vmem [shape: f32[1,512], index: 2, kind: input, shape index: {}]   ;;  %s2633_s3 = inlined_call_operand.vmem [shape: f32[1,512], index: 3, kind: input, shape index: {}]   ;;  %s2634_s4 = inlined_call_operand.vmem [shape: f32[1,512], index: 4, kind: input, shape index: {}]   ;;  %s2635_s5 = inlined_call_operand.hbm [shape: bf16[512,512], index: 5, kind: input, shape index: {}]   ;;  %s2636_s6 = inlined_call_operand.vmem [shape: f32[1,512], index: 6, kind: input, shape index: {}]   ;;  %s2637_s7 = inlined_call_operand.hbm [shape: bf16[512,128], index: 7, kind: input, shape index: {}]   ;;  %s2638_s8 = inlined_call_operand.vmem [shape: f32[1,128], index: 8, kind: input, shape index: {}]   ;;  %s2639_s9 = inlined_call_operand.vmem [shape: bf16[16,128], index: 9, kind: output, shape index: {}]  }
   0x1   :  { %15 = vsyncpa [#allocation5], 0  ;;  %s2411_s30 = smov [#allocation2]  }
   0x2   :  { %s31_s10 = sshll.u32 %s2411_s30, 4  ;;  %s32_s10 = int_to_ptr.vmem [resolvable:$true] %s31_s10 }
   0x3   :  { %s2375_s11 = scalar_lea.vmem %s32_s10, 16384  ;;  %p2380_p1 = scmp.lt.s32.totalorder %s32_s10, %s32_s10 }
   0x4   :  { %p2376_p0 = scmp.ne.s32.totalorder %s32_s10, %s2375_s11  ;;  %p2381_p2 = scmp.lt.s32.totalorder %s2375_s11, %s2375_s11 }
   0x6   :  { %p2382_p3 = por %p2381_p2, %p2380_p1 }
   0x8   :  { %p2383_p4 = pnand %p2382_p3, %p2376_p0 }
   0xa   :  { %2386 = shalt.err (!%p2383_p4)
}
   0xb   :  { %s2412_s12 = smov 256   ;;  %s2413_s13 = smov 16  }
   0xc   :  { %37 = dma.hbm_to_vmem [thread:$0]  %s2635_s5, 16384, %s32_s10, [#allocation3], %s2412_s12, %s2412_s12, %s2413_s13  }
   0xd   :  { %s2414_s16 = smov [#allocation4]  }
   0xe   :  { %s45_s17 = sshll.u32 %s2414_s16, 4  ;;  %s46_s17 = int_to_ptr.vmem [resolvable:$true] %s45_s17 }
   0xf   :  { %s2395_s18 = scalar_lea.vmem %s46_s17, 4096  ;;  %p2400_p6 = scmp.lt.s32.totalorder %s46_s17, %s46_s17 }
  0x10   :  { %p2396_p5 = scmp.ne.s32.totalorder %s46_s17, %s2395_s18  ;;  %p2401_p7 = scmp.lt.s32.totalorder %s2395_s18, %s2395_s18 }
  0x12   :  { %p2402_p8 = por %p2401_p7, %p2400_p6 }
  0x14   :  { %p2403_p9 = pnand %p2402_p8, %p2396_p5 }
  0x16   :  { %2406 = shalt.err (!%p2403_p9)
}
  0x17   :  { %s2415_s19 = smov 64   ;;  %s2416_s20 = smov 4  }
  0x18   :  { %51 = dma.hbm_to_vmem [thread:$0]  %s2637_s7, 4096, %s46_s17, [#allocation5], %s2415_s19, %s2415_s19, %s2416_s20  }
  0x19   :  { %2407 = dma.done.wait [#allocation3], 16384  }
  0x1a   :  { %2408 = vsyncadd [#allocation3], 4294950912 }
  0x1b   :  { %2409 = dma.done.wait [#allocation5], 4096  }
  0x1c   :  { %2410 = vsyncadd [#allocation5], 4294963200  ;;  %v2417_v0 = vmov 1   ;;  %v2418_v1 = vmov 0   ;;  %v65_v2 = vld [vmem:[%s2630_s0] sm:$0xff]  ;;  %v66_v3 = vld [vmem:[%s2630_s0 + $0x8] sm:$0xff]  ;;  %v85_v12 = vlaneseq }
  0x1d   :  { %2114 = vset.pattern.permute.xlu1 %v2417_v0  ;;  %2113 = vset.pattern.permute.xlu0 %v2418_v1  ;;  %v67_v4 = vmax.f32 %v65_v2, 0.0  ;;  %v68_v5 = vmax.f32 %v66_v3, 0.0  ;;  %v2419_v8 = vmov 2   ;;  %v2420_v9 = vmov 3   ;;  %v2119_v10 = vld [vmem:[#allocation2 + $0xe4] ss:$16 sps:$4 sm:$0xff]  }
  0x1e   :  { %v2121_v11 = vld [vmem:[#allocation2 + $0x2e4] ss:$16 sps:$4 sm:$0xff]   ;;  %1295 = vmatprep.subr.bf16.mxu0 %v2119_v10  ;;  %v86_v13 = vshrl.u32 %v85_v12, 7  ;;  %v72_v17 = vld [vmem:[%s2631_s1 + $0x8] sm:$0xff]  ;;  %v129_v36 = vld [vmem:[%s2632_s2] sm:$0xf] }
  0x1f   :  { %v69_v6 = vmin.f32 %v67_v4, 1.0  ;;  %v70_v7 = vmin.f32 %v68_v5, 1.0  ;;  %1338 = vmatprep.subr.bf16.mxu1 %v2121_v11  ;;  %v71_v15 = vld [vmem:[%s2631_s1] sm:$0xff] }
  0x20   :  { %v2483_v14 = vsub.s32 1, %v86_v13  ;;  %v173_v16 = vsub.s32 5, %v86_v13  ;;  %v2491_v18 = vsub.s32 0, %v86_v13  ;;  %v91_v19 = vsub.s32 4, %v86_v13 }
  0x21   :  { %160 = vperm.xlu1 %2114, %v69_v6   ;;  %75 = vperm.xlu0 %2113, %v69_v6   ;;  %v233_v26 = vsub.s32 6, %v86_v13  ;;  %v2498_v29 = vsub.s32 2, %v86_v13  ;;  %v2500_v30 = vsub.s32 3, %v86_v13  ;;  %v293_v31 = vsub.s32 7, %v86_v13 }
  0x22   :  { %v170_v20 = vrot.slane %v71_v15, %v2483_v14  ;;  %v174_v21 = vrot.slane %v71_v15, %v173_v16  ;;  %v178_v22 = vrot.slane %v72_v17, %v2483_v14  ;;  %v182_v23 = vrot.slane %v72_v17, %v173_v16 }
  0x23   :  { %v88_v24 = vrot.slane %v71_v15, %v2491_v18  ;;  %v92_v25 = vrot.slane %v71_v15, %v91_v19  ;;  %v96_v27 = vrot.slane %v72_v17, %v2491_v18  ;;  %v100_v35 = vrot.slane %v72_v17, %v91_v19 }
  0x24   :  { %v190_v28 = vrot.slane %v170_v20, %v2483_v14  ;;  %v194_v32 = vrot.slane %v174_v21, %v2483_v14  ;;  %v198_v33 = vrot.slane %v178_v22, %v2483_v14  ;;  %v202_v34 = vrot.slane %v182_v23, %v2483_v14 }
  0x25   :  { %164 = vperm.xlu1 %2114, %v70_v7   ;;  %80 = vperm.xlu0 %2113, %v70_v7   ;;  %v108_v37 = vrot.slane %v88_v24, %v2491_v18  ;;  %v112_v38 = vrot.slane %v92_v25, %v2491_v18  ;;  %v230_v39 = vrot.slane %v71_v15, %v2498_v29 }
  0x26   :  { %v234_v40 = vrot.slane %v71_v15, %v233_v26  ;;  %v116_v41 = vrot.slane %v96_v27, %v2491_v18  ;;  %v238_v42 = vrot.slane %v72_v17, %v2498_v29  ;;  %v242_v43 = vrot.slane %v72_v17, %v233_v26 }
  0x27   :  { %v290_v44 = vrot.slane %v71_v15, %v2500_v30  ;;  %v134_v46 = vrot.slane %v129_v36, %v2491_v18  ;;  %v294_v48 = vrot.slane %v71_v15, %v293_v31  ;;  %v298_v49 = vrot.slane %v72_v17, %v2500_v30 }
  0x28   :  { %v302_v50 = vrot.slane %v72_v17, %v293_v31  ;;  %v120_v51 = vrot.slane %v100_v35, %v2491_v18  ;;  %v138_v52 = vrot.slane %v129_v36, %v2483_v14  ;;  %v142_v53 = vrot.slane %v129_v36, %v2498_v29 }
  0x29   :  { %2116 = vset.pattern.permute.xlu1 %v2419_v8  ;;  %2115 = vset.pattern.permute.xlu0 %v2419_v8  ;;  %v146_v54 = vrot.slane %v129_v36, %v2500_v30  ;;  %v250_v57 = vrot.slane %v230_v39, %v2498_v29  ;;  %v254_v58 = vrot.slane %v234_v40, %v2498_v29 }
  0x2a   :  { %224 = vperm.xlu1 %2116, %v70_v7   ;;  %220 = vperm.xlu0 %2115, %v69_v6   ;;  %v258_v60 = vrot.slane %v238_v42, %v2498_v29  ;;  %v262_v61 = vrot.slane %v242_v43, %v2498_v29  ;;  %v310_v62 = vrot.slane %v290_v44, %v2500_v30 }
  0x2b   :  { %v314_v2 = vrot.slane %v294_v48, %v2500_v30  ;;  %v318_v3 = vrot.slane %v298_v49, %v2500_v30  ;;  %v322_v4 = vrot.slane %v302_v50, %v2500_v30 }
  0x2e   :  { %2117 = vset.pattern.permute.xlu1 %v2420_v9  ;;  %2118 = vset.pattern.permute.xlu0 %v2420_v9 }
  0x2f   :  { %280 = vperm.xlu1 %2117, %v69_v6   ;;  %284 = vperm.xlu0 %2118, %v70_v7  }
  0x9c   :  { %v161_v45 = vpop.permute.xlu1 %160  ;;  %v76_v47 = vpop.permute.xlu0 %75 }
  0x9d   :  { %v121_v55 = vmul.f32 %v108_v37, %v76_v47  ;;  %v122_v56 = vmul.f32 %v112_v38, %v76_v47  ;;  %v123_v59 = vmul.f32 %v116_v41, %v76_v47  ;;  %v203_v63 = vmul.f32 %v190_v28, %v161_v45 }
  0x9e   :  { %v204_v5 = vmul.f32 %v194_v32, %v161_v45  ;;  %v124_v6 = vmul.f32 %v120_v51, %v76_v47  ;;  %v205_v13 = vmul.f32 %v198_v33, %v161_v45  ;;  %v206_v15 = vmul.f32 %v202_v34, %v161_v45 }
  0x9f   :  { %v151_v7 = vadd.f32 %v134_v46, %v121_v55  ;;  %v152_v8 = vadd.f32 %v138_v52, %v122_v56  ;;  %v153_v16 = vadd.f32 %v142_v53, %v123_v59 }
  0xa0   :  { %v165_v0 = vpop.permute.xlu1 %164  ;;  %v81_v1 = vpop.permute.xlu0 %80  ;;  %v154_v23 = vadd.f32 %v146_v54, %v124_v6 }
  0xa1   :  { %v125_v9 = vmul.f32 %v108_v37, %v81_v1  ;;  %v126_v10 = vmul.f32 %v112_v38, %v81_v1  ;;  %v127_v11 = vmul.f32 %v116_v41, %v81_v1  ;;  %v128_v12 = vmul.f32 %v120_v51, %v81_v1 }
  0xa2   :  { %v207_v17 = vmul.f32 %v190_v28, %v165_v0  ;;  %v208_v19 = vmul.f32 %v194_v32, %v165_v0  ;;  %v209_v24 = vmul.f32 %v198_v33, %v165_v0  ;;  %v210_v25 = vmul.f32 %v202_v34, %v165_v0 }
  0xa3   :  { %v155_v20 = vadd.f32 %v134_v46, %v125_v9  ;;  %v156_v21 = vadd.f32 %v138_v52, %v126_v10  ;;  %v157_v22 = vadd.f32 %v142_v53, %v127_v11  ;;  %v158_v26 = vadd.f32 %v146_v54, %v128_v12 }
  0xa4   :  { %v211_v37 = vadd.f32 %v203_v63, %v151_v7  ;;  %v212_v38 = vadd.f32 %v204_v5, %v152_v8  ;;  %v213_v42 = vadd.f32 %v205_v13, %v153_v16  ;;  %v214_v47 = vadd.f32 %v206_v15, %v154_v23 }
  0xa5   :  { %v225_v27 = vpop.permute.xlu1 %224  ;;  %v221_v31 = vpop.permute.xlu0 %220  ;;  %v215_v35 = vadd.f32 %v207_v17, %v155_v20  ;;  %v216_v36 = vadd.f32 %v208_v19, %v156_v21  ;;  %v217_v39 = vadd.f32 %v209_v24, %v157_v22  ;;  %v218_v45 = vadd.f32 %v210_v25, %v158_v26 }
  0xa6   :  { %v267_v40 = vmul.f32 %v250_v57, %v225_v27  ;;  %v268_v41 = vmul.f32 %v254_v58, %v225_v27  ;;  %v269_v43 = vmul.f32 %v258_v60, %v225_v27  ;;  %v263_v28 = vmul.f32 %v250_v57, %v221_v31 }
  0xa7   :  { %v264_v32 = vmul.f32 %v254_v58, %v221_v31  ;;  %v265_v44 = vmul.f32 %v258_v60, %v221_v31  ;;  %v270_v46 = vmul.f32 %v262_v61, %v225_v27  ;;  %v266_v33 = vmul.f32 %v262_v61, %v221_v31 }
  0xa8   :  { %v275_v34 = vadd.f32 %v267_v40, %v215_v35  ;;  %v276_v48 = vadd.f32 %v268_v41, %v216_v36  ;;  %v271_v49 = vadd.f32 %v263_v28, %v211_v37  ;;  %v277_v59 = vadd.f32 %v269_v43, %v217_v39  ;;  %v2123_v37 = vld [vmem:[#allocation2 + $0xe0] ss:$16 sps:$4 sm:$0xff]   ;;  %v2125_v39 = vld [vmem:[#allocation2 + $0xc4] ss:$16 sps:$4 sm:$0xff]  }
  0xa9   :  { %v272_v50 = vadd.f32 %v264_v32, %v212_v38  ;;  %v273_v53 = vadd.f32 %v265_v44, %v213_v42  ;;  %v274_v9 = vadd.f32 %v266_v33, %v214_v47  ;;  %v278_v10 = vadd.f32 %v270_v46, %v218_v45  ;;  %v2124_v38 = vld [vmem:[#allocation2 + $0x2e0] ss:$16 sps:$4 sm:$0xff]   ;;  %1296 = vmatpush1.bf16.msra.mxu0 %v2123_v37  ;;  %v2127_v40 = vld [vmem:[#allocation2 + $0x2c4] ss:$16 sps:$4 sm:$0xff]  }
  0xaa   :  { %v281_v51 = vpop.permute.xlu1 %280  ;;  %v285_v52 = vpop.permute.xlu0 %284  ;;  %1339 = vmatpush1.bf16.msra.mxu1 %v2124_v38  ;;  %v2129_v41 = vld [vmem:[#allocation2 + $0xc0] ss:$16 sps:$4 sm:$0xff]   ;;  %1297 = vmatprep.subr.bf16.mxu0 %v2125_v39  ;;  %v2131_v43 = vld [vmem:[#allocation2 + $0xa4] ss:$16 sps:$4 sm:$0xff]  }
  0xab   :  { %v323_v54 = vmul.f32 %v310_v62, %v281_v51  ;;  %v324_v55 = vmul.f32 %v314_v2, %v281_v51  ;;  %v325_v56 = vmul.f32 %v318_v3, %v281_v51  ;;  %v327_v63 = vmul.f32 %v310_v62, %v285_v52  ;;  %v2130_v42 = vld [vmem:[#allocation2 + $0x2c0] ss:$16 sps:$4 sm:$0xff]   ;;  %1340 = vmatprep.subr.bf16.mxu1 %v2127_v40  ;;  %v2133_v28 = vld [vmem:[#allocation2 + $0x2a4] ss:$16 sps:$4 sm:$0xff]  }
  0xac   :  { %v328_v0 = vmul.f32 %v314_v2, %v285_v52  ;;  %v329_v57 = vmul.f32 %v318_v3, %v285_v52  ;;  %v326_v58 = vmul.f32 %v322_v4, %v281_v51  ;;  %v330_v5 = vmul.f32 %v322_v4, %v285_v52  ;;  %v2135_v32 = vld [vmem:[#allocation2 + $0xa0] ss:$16 sps:$4 sm:$0xff]   ;;  %v2137_v45 = vld [vmem:[#allocation2 + $0x84] ss:$16 sps:$4 sm:$0xff]  }
  0xad   :  { %v2528_v60 = vadd.f32 %v323_v54, %v271_v49  ;;  %v2530_v1 = vadd.f32 %v324_v55, %v272_v50  ;;  %v2532_v61 = vadd.f32 %v325_v56, %v273_v53  ;;  %v2534_v6 = vadd.f32 %v327_v63, %v275_v34  ;;  %1298 = vmatpush1.bf16.msra.mxu0 %v2129_v41  ;;  %v2136_v44 = vld [vmem:[#allocation2 + $0x2a0] ss:$16 sps:$4 sm:$0xff]   ;;  %v2139_v46 = vld [vmem:[#allocation2 + $0x284] ss:$16 sps:$4 sm:$0xff]  }
  0xae   :  { %v2536_v7 = vadd.f32 %v328_v0, %v276_v48  ;;  %v2538_v8 = vadd.f32 %v329_v57, %v277_v59  ;;  %v2552_v13 = vadd.f32 %v326_v58, %v274_v9  ;;  %v2557_v19 = vadd.f32 %v330_v5, %v278_v10  ;;  %1341 = vmatpush1.bf16.msra.mxu1 %v2130_v42  ;;  %v2141_v47 = vld [vmem:[#allocation2 + $0x80] ss:$16 sps:$4 sm:$0xff]   ;;  %v2143_v34 = vld [vmem:[#allocation2 + $0x64] ss:$16 sps:$4 sm:$0xff]  }
  0xaf   :  { %v339_v62 = vadd.f32 %v2530_v1, %v2528_v60  ;;  %v349_v2 = vmul.f32 %v2528_v60, %v2528_v60  ;;  %v350_v3 = vmul.f32 %v2530_v1, %v2530_v1  ;;  %v353_v11 = vmul.f32 %v2534_v6, %v2534_v6  ;;  %1299 = vmatprep.subr.bf16.mxu0 %v2131_v43  ;;  %v2142_v33 = vld [vmem:[#allocation2 + $0x280] ss:$16 sps:$4 sm:$0xff]   ;;  %v2145_v48 = vld [vmem:[#allocation2 + $0x264] ss:$16 sps:$4 sm:$0xff]  }
  0xb0   :  { %v344_v4 = vadd.f32 %v2536_v7, %v2534_v6  ;;  %v354_v12 = vmul.f32 %v2536_v7, %v2536_v7  ;;  %v351_v16 = vmul.f32 %v2532_v61, %v2532_v61  ;;  %v355_v21 = vmul.f32 %v2538_v8, %v2538_v8  ;;  %1342 = vmatprep.subr.bf16.mxu1 %v2133_v28  ;;  %v2147_v49 = vld [vmem:[#allocation2 + $0x60] ss:$16 sps:$4 sm:$0xff]   ;;  %v2149_v51 = vld [vmem:[#allocation2 + $0x44] ss:$16 sps:$4 sm:$0xff]  }
  0xb1   :  { %v340_v15 = vadd.f32 %v339_v62, %v2532_v61  ;;  %v357_v17 = vadd.f32 %v350_v3, %v349_v2  ;;  %v352_v27 = vmul.f32 %v2552_v13, %v2552_v13  ;;  %v356_v31 = vmul.f32 %v2557_v19, %v2557_v19  ;;  %1300 = vmatpush1.bf16.msra.mxu0 %v2135_v32  ;;  %v2148_v50 = vld [vmem:[#allocation2 + $0x260] ss:$16 sps:$4 sm:$0xff]   ;;  %v2151_v52 = vld [vmem:[#allocation2 + $0x244] ss:$16 sps:$4 sm:$0xff]  }
  0xb2   :  { %v345_v20 = vadd.f32 %v344_v4, %v2538_v8  ;;  %v362_v22 = vadd.f32 %v354_v12, %v353_v11  ;;  %1343 = vmatpush1.bf16.msra.mxu1 %v2136_v44  ;;  %1301 = vmatprep.subr.bf16.mxu0 %v2137_v45  ;;  %v2153_v53 = vld [vmem:[#allocation2 + $0x40] ss:$16 sps:$4 sm:$0xff]   ;;  %v2155_v55 = vld [vmem:[#allocation2 + $0x24] ss:$16 sps:$4 sm:$0xff]   ;;  %v2217_v45 = vld [vmem:[#allocation2 + $0xec] ss:$16 sps:$4 sm:$0xff]  }
  0xb3   :  { %v341_v23 = vadd.f32 %v340_v15, %v2552_v13  ;;  %v358_v24 = vadd.f32 %v357_v17, %v351_v16  ;;  %1344 = vmatprep.subr.bf16.mxu1 %v2139_v46  ;;  %v2154_v54 = vld [vmem:[#allocation2 + $0x240] ss:$16 sps:$4 sm:$0xff]   ;;  %v2157_v56 = vld [vmem:[#allocation2 + $0x224] ss:$16 sps:$4 sm:$0xff]   ;;  %v2220_v46 = vld [vmem:[#allocation2 + $0x2ec] ss:$16 sps:$4 sm:$0xff]  }
  0xb4   :  { %v346_v25 = vadd.f32 %v345_v20, %v2557_v19  ;;  %v363_v26 = vadd.f32 %v362_v22, %v355_v21  ;;  %v2159_v59 = vld [vmem:[#allocation2 + $0x20] ss:$16 sps:$4 sm:$0xff]   ;;  %v2161_v0 = vld [vmem:[#allocation2 + $0x4] ss:$16 sps:$4 sm:$0xff]  }
  0xb5   :  { %342 = vadd.xlane.f32.xlu1 %v341_v23  ;;  %v359_v35 = vadd.f32 %v358_v24, %v352_v27  ;;  %1302 = vmatpush1.bf16.msra.mxu0 %v2141_v47  ;;  %v2160_v63 = vld [vmem:[#allocation2 + $0x220] ss:$16 sps:$4 sm:$0xff]   ;;  %v2163_v57 = vld [vmem:[#allocation2 + $0x204] ss:$16 sps:$4 sm:$0xff]  }
  0xb6   :  { %347 = vadd.xlane.f32.xlu0 %v346_v25  ;;  %v364_v36 = vadd.f32 %v363_v26, %v356_v31  ;;  %1345 = vmatpush1.bf16.msra.mxu1 %v2142_v33  ;;  %v2165_v58 = vld [vmem:[#allocation2] ss:$16 sps:$4 sm:$0xff]   ;;  %v2167_v9 = vld [vmem:[#allocation2 + $0x1e4] ss:$16 sps:$4 sm:$0xff]  }
  0xb7   :  { %1303 = vmatprep.subr.bf16.mxu0 %v2143_v34  ;;  %1346 = vmatprep.subr.bf16.mxu1 %v2145_v48  ;;  %v2166_v5 = vld [vmem:[#allocation2 + $0x200] ss:$16 sps:$4 sm:$0xff]   ;;  %v2169_v62 = vld [vmem:[#allocation2 + $0x3e4] ss:$16 sps:$4 sm:$0xff]  }
  0xb8   :  { %v2171_v2 = vld [vmem:[#allocation2 + $0x1e0] ss:$16 sps:$4 sm:$0xff]   ;;  %v2173_v10 = vld [vmem:[#allocation2 + $0x1c4] ss:$16 sps:$4 sm:$0xff]  }
  0xb9   :  { %360 = vadd.xlane.f32.xlu1 %v359_v35  ;;  %1304 = vmatpush1.bf16.msra.mxu0 %v2147_v49  ;;  %v2172_v3 = vld [vmem:[#allocation2 + $0x3e0] ss:$16 sps:$4 sm:$0xff]   ;;  %v2175_v4 = vld [vmem:[#allocation2 + $0x3c4] ss:$16 sps:$4 sm:$0xff]  }
  0xba   :  { %365 = vadd.xlane.f32.xlu0 %v364_v36  ;;  %1347 = vmatpush1.bf16.msra.mxu1 %v2148_v50  ;;  %v2177_v11 = vld [vmem:[#allocation2 + $0x1c0] ss:$16 sps:$4 sm:$0xff]   ;;  %v2179_v15 = vld [vmem:[#allocation2 + $0x1a4] ss:$16 sps:$4 sm:$0xff]  }
  0xbb   :  { %1305 = vmatprep.subr.bf16.mxu0 %v2149_v51  ;;  %1348 = vmatprep.subr.bf16.mxu1 %v2151_v52  ;;  %v2178_v12 = vld [vmem:[#allocation2 + $0x3c0] ss:$16 sps:$4 sm:$0xff]   ;;  %v2181_v16 = vld [vmem:[#allocation2 + $0x3a4] ss:$16 sps:$4 sm:$0xff]  }
  0xbc   :  { %v2183_v17 = vld [vmem:[#allocation2 + $0x1a0] ss:$16 sps:$4 sm:$0xff]   ;;  %v2185_v21 = vld [vmem:[#allocation2 + $0x184] ss:$16 sps:$4 sm:$0xff]  }
  0xbd   :  { %1306 = vmatpush1.bf16.msra.mxu0 %v2153_v53  ;;  %v2184_v20 = vld [vmem:[#allocation2 + $0x3a0] ss:$16 sps:$4 sm:$0xff]   ;;  %v2187_v22 = vld [vmem:[#allocation2 + $0x384] ss:$16 sps:$4 sm:$0xff]  }
  0xbe   :  { %1349 = vmatpush1.bf16.msra.mxu1 %v2154_v54  ;;  %1307 = vmatprep.subr.bf16.mxu0 %v2155_v55  ;;  %v2189_v23 = vld [vmem:[#allocation2 + $0x180] ss:$16 sps:$4 sm:$0xff]   ;;  %v2191_v25 = vld [vmem:[#allocation2 + $0x164] ss:$16 sps:$4 sm:$0xff]  }
  0xbf   :  { %1350 = vmatprep.subr.bf16.mxu1 %v2157_v56  ;;  %v2190_v24 = vld [vmem:[#allocation2 + $0x380] ss:$16 sps:$4 sm:$0xff]   ;;  %v2193_v26 = vld [vmem:[#allocation2 + $0x364] ss:$16 sps:$4 sm:$0xff]  }
  0xc0   :  { %v2195_v27 = vld [vmem:[#allocation2 + $0x160] ss:$16 sps:$4 sm:$0xff]   ;;  %v2197_v35 = vld [vmem:[#allocation2 + $0x144] ss:$16 sps:$4 sm:$0xff]  }
  0xc1   :  { %1308 = vmatpush1.bf16.msra.mxu0 %v2159_v59  ;;  %v2196_v31 = vld [vmem:[#allocation2 + $0x360] ss:$16 sps:$4 sm:$0xff]   ;;  %v2199_v36 = vld [vmem:[#allocation2 + $0x344] ss:$16 sps:$4 sm:$0xff]  }
  0xc2   :  { %1351 = vmatpush1.bf16.msra.mxu1 %v2160_v63  ;;  %1309 = vmatprep.subr.bf16.mxu0 %v2161_v0  ;;  %v2201_v37 = vld [vmem:[#allocation2 + $0x140] ss:$16 sps:$4 sm:$0xff]   ;;  %v2203_v39 = vld [vmem:[#allocation2 + $0x124] ss:$16 sps:$4 sm:$0xff]  }
  0xc3   :  { %1352 = vmatprep.subr.bf16.mxu1 %v2163_v57  ;;  %v2202_v38 = vld [vmem:[#allocation2 + $0x340] ss:$16 sps:$4 sm:$0xff]   ;;  %v2205_v40 = vld [vmem:[#allocation2 + $0x324] ss:$16 sps:$4 sm:$0xff]  }
  0xc4   :  { %v2207_v41 = vld [vmem:[#allocation2 + $0x120] ss:$16 sps:$4 sm:$0xff]   ;;  %v2209_v43 = vld [vmem:[#allocation2 + $0x104] ss:$16 sps:$4 sm:$0xff]  }
  0xc5   :  { %1310 = vmatpush1.bf16.msra.mxu0 %v2165_v58  ;;  %v2208_v42 = vld [vmem:[#allocation2 + $0x320] ss:$16 sps:$4 sm:$0xff]   ;;  %v2211_v28 = vld [vmem:[#allocation2 + $0x304] ss:$16 sps:$4 sm:$0xff]  }
  0xc6   :  { %1353 = vmatpush1.bf16.msra.mxu1 %v2166_v5  ;;  %1311 = vmatprep.subr.bf16.mxu0 %v2167_v9  ;;  %v2213_v32 = vld [vmem:[#allocation2 + $0x100] ss:$16 sps:$4 sm:$0xff]  }
  0xc7   :  { %1354 = vmatprep.subr.bf16.mxu1 %v2169_v62  ;;  %v2214_v44 = vld [vmem:[#allocation2 + $0x300] ss:$16 sps:$4 sm:$0xff]  }
  0xc8   :  { %v397_v58 = vld [vmem:[%s2633_s3] sm:$0xf] }
  0xc9   :  { %1312 = vmatpush2.bf16.msra.mxu0 %v2171_v2  ;;  %v427_v5 = vld [vmem:[%s2634_s4] sm:$0xf]  ;;  %v406_v9 = vrot.slane %v397_v58, %v2483_v14  ;;  %v414_v2 = vrot.slane %v397_v58, %v2500_v30 }
  0xca   :  { %1355 = vmatpush2.bf16.msra.mxu1 %v2172_v3  ;;  %1313 = vmatprep.subr.bf16.mxu0 %v2173_v10  ;;  %v436_v62 = vrot.slane %v427_v5, %v2483_v14  ;;  %v444_v3 = vrot.slane %v427_v5, %v2500_v30  ;;  %v402_v10 = vrot.slane %v397_v58, %v2491_v18 }
  0xcb   :  { %1356 = vmatprep.subr.bf16.mxu1 %v2175_v4  ;;  %v432_v4 = vrot.slane %v427_v5, %v2491_v18 }
  0xcd   :  { %1314 = vmatpush2.bf16.msra.mxu0 %v2177_v11  ;;  %v410_v11 = vrot.slane %v397_v58, %v2498_v29 }
  0xce   :  { %1357 = vmatpush2.bf16.msra.mxu1 %v2178_v12  ;;  %1315 = vmatprep.subr.bf16.mxu0 %v2179_v15  ;;  %v440_v12 = vrot.slane %v427_v5, %v2498_v29 }
  0xcf   :  { %1358 = vmatprep.subr.bf16.mxu1 %v2181_v16 }
  0xd1   :  { %1316 = vmatpush2.bf16.msra.mxu0 %v2183_v17 }
  0xd2   :  { %1359 = vmatpush2.bf16.msra.mxu1 %v2184_v20  ;;  %1317 = vmatprep.subr.bf16.mxu0 %v2185_v21 }
  0xd3   :  { %1360 = vmatprep.subr.bf16.mxu1 %v2187_v22 }
  0xd5   :  { %1318 = vmatpush2.bf16.msra.mxu0 %v2189_v23 }
  0xd6   :  { %1361 = vmatpush2.bf16.msra.mxu1 %v2190_v24  ;;  %1319 = vmatprep.subr.bf16.mxu0 %v2191_v25 }
  0xd7   :  { %1362 = vmatprep.subr.bf16.mxu1 %v2193_v26 }
  0xd9   :  { %1320 = vmatpush2.bf16.msra.mxu0 %v2195_v27 }
  0xda   :  { %1363 = vmatpush2.bf16.msra.mxu1 %v2196_v31  ;;  %1321 = vmatprep.subr.bf16.mxu0 %v2197_v35 }
  0xdb   :  { %1364 = vmatprep.subr.bf16.mxu1 %v2199_v36 }
  0xdd   :  { %1322 = vmatpush2.bf16.msra.mxu0 %v2201_v37 }
  0xde   :  { %1365 = vmatpush2.bf16.msra.mxu1 %v2202_v38  ;;  %1323 = vmatprep.subr.bf16.mxu0 %v2203_v39 }
  0xdf   :  { %1366 = vmatprep.subr.bf16.mxu1 %v2205_v40 }
  0xe1   :  { %1324 = vmatpush2.bf16.msra.mxu0 %v2207_v41 }
  0xe2   :  { %1367 = vmatpush2.bf16.msra.mxu1 %v2208_v42  ;;  %1325 = vmatprep.subr.bf16.mxu0 %v2209_v43 }
  0xe3   :  { %1368 = vmatprep.subr.bf16.mxu1 %v2211_v28 }
  0xe5   :  { %1326 = vmatpush2.bf16.msra.mxu0 %v2213_v32 }
  0xe6   :  { %1369 = vmatpush2.bf16.msra.mxu1 %v2214_v44  ;;  %1381 = vmatprep.subr.bf16.mxu0 %v2217_v45 }
  0xe7   :  { %1424 = vmatprep.subr.bf16.mxu1 %v2220_v46 }
 0x13e   :  { %v343_v47 = vpop.xlane.xlu1 %342 }
 0x13f   :  { %v367_v33 = vmul.f32 0.001953125, %v343_v47  ;;  %v348_v34 = vpop.xlane.xlu0 %347 }
 0x140   :  { %v368_v48 = vmul.f32 0.001953125, %v348_v34 }
 0x141   :  { %v371_v50 = vmul.f32 %v367_v33, %v367_v33  ;;  %v377_v15 = vsub.f32 %v2528_v60, %v367_v33  ;;  %v378_v16 = vsub.f32 %v2530_v1, %v367_v33  ;;  %v379_v17 = vsub.f32 %v2532_v61, %v367_v33 }
 0x142   :  { %v361_v49 = vpop.xlane.xlu1 %360  ;;  %v372_v53 = vmul.f32 %v368_v48, %v368_v48  ;;  %v380_v20 = vsub.f32 %v2552_v13, %v367_v33  ;;  %v381_v22 = vsub.f32 %v2534_v6, %v368_v48  ;;  %v382_v23 = vsub.f32 %v2536_v7, %v368_v48 }
 0x143   :  { %v369_v51 = vmul.f32 0.001953125, %v361_v49  ;;  %v366_v52 = vpop.xlane.xlu0 %365  ;;  %v383_v24 = vsub.f32 %v2538_v8, %v368_v48  ;;  %v384_v25 = vsub.f32 %v2557_v19, %v368_v48 }
 0x144   :  { %v370_v54 = vmul.f32 0.001953125, %v366_v52 }
 0x145   :  { %v373_v55 = vsub.f32 %v369_v51, %v371_v50 }
 0x146   :  { %v374_v56 = vsub.f32 %v370_v54, %v372_v53 }
 0x147   :  { %v375_v59 = vmax.f32 %v373_v55, 0.0 }
 0x148   :  { %v376_v63 = vmax.f32 %v374_v56, 0.0 }
 0x149   :  { %v385_v0 = vadd.f32 1e-05, %v375_v59 }
 0x14a   :  { %v386_v57 = vadd.f32 1e-05, %v376_v63 }
 0x14b   :  { %2343 = vrsqrt.f32 %v385_v0 }
 0x14c   :  { %2345 = vrsqrt.f32 %v386_v57 }
 0x158   :  { %v2344_v21 = vpop.eup %2343 }
 0x159   :  { %v2346_v26 = vpop.eup %2345  ;;  %v390_v27 = vmul.f32 %v2344_v21, %v378_v16  ;;  %v392_v31 = vmul.f32 %v2344_v21, %v380_v20  ;;  %v389_v35 = vmul.f32 %v2344_v21, %v377_v15  ;;  %v391_v60 = vmul.f32 %v2344_v21, %v379_v17 }
 0x15a   :  { %v394_v36 = vmul.f32 %v2346_v26, %v382_v23  ;;  %v396_v1 = vmul.f32 %v2346_v26, %v384_v25  ;;  %v393_v37 = vmul.f32 %v2346_v26, %v381_v22  ;;  %v395_v61 = vmul.f32 %v2346_v26, %v383_v24 }
 0x15b   :  { %v420_v38 = vmul.f32 %v406_v9, %v390_v27  ;;  %v422_v13 = vmul.f32 %v414_v2, %v392_v31  ;;  %v419_v39 = vmul.f32 %v402_v10, %v389_v35  ;;  %v421_v40 = vmul.f32 %v410_v11, %v391_v60  ;;  %v2215_v27 = vld [vmem:[#allocation2 + $0xe8] ss:$16 sps:$4 sm:$0xff]  }
 0x15c   :  { %v424_v6 = vmul.f32 %v406_v9, %v394_v36  ;;  %v426_v41 = vmul.f32 %v414_v2, %v396_v1  ;;  %v423_v7 = vmul.f32 %v402_v10, %v393_v37  ;;  %v425_v42 = vmul.f32 %v410_v11, %v395_v61  ;;  %v2218_v60 = vld [vmem:[#allocation2 + $0x2e8] ss:$16 sps:$4 sm:$0xff]   ;;  %v2223_v37 = vld [vmem:[#allocation2 + $0xcc] ss:$16 sps:$4 sm:$0xff]  }
 0x15d   :  { %v450_v8 = vadd.f32 %v436_v62, %v420_v38  ;;  %v452_v43 = vadd.f32 %v444_v3, %v422_v13  ;;  %v449_v19 = vadd.f32 %v432_v4, %v419_v39  ;;  %v451_v28 = vadd.f32 %v440_v12, %v421_v40  ;;  %v2226_v61 = vld [vmem:[#allocation2 + $0x2cc] ss:$16 sps:$4 sm:$0xff]   ;;  %v2221_v38 = vld [vmem:[#allocation2 + $0xc8] ss:$16 sps:$4 sm:$0xff]  }
 0x15e   :  { %v454_v32 = vadd.f32 %v436_v62, %v424_v6  ;;  %v456_v44 = vadd.f32 %v444_v3, %v426_v41  ;;  %v453_v45 = vadd.f32 %v432_v4, %v423_v7  ;;  %v455_v46 = vadd.f32 %v440_v12, %v425_v42  ;;  %v2224_v13 = vld [vmem:[#allocation2 + $0x2c8] ss:$16 sps:$4 sm:$0xff]   ;;  %v2229_v39 = vld [vmem:[#allocation2 + $0xac] ss:$16 sps:$4 sm:$0xff]  }
 0x15f   :  { %v2232_v40 = vld [vmem:[#allocation2 + $0x2ac] ss:$16 sps:$4 sm:$0xff]   ;;  %v2227_v6 = vld [vmem:[#allocation2 + $0xa8] ss:$16 sps:$4 sm:$0xff]  }
 0x160   :  { %v458_v47 = vpack.c.bf16 %v454_v32, %v450_v8  ;;  %v460_v33 = vpack.c.bf16 %v456_v44, %v452_v43  ;;  %v457_v34 = vpack.c.bf16 %v453_v45, %v449_v19  ;;  %v459_v48 = vpack.c.bf16 %v455_v46, %v451_v28  ;;  %v2230_v41 = vld [vmem:[#allocation2 + $0x2a8] ss:$16 sps:$4 sm:$0xff]   ;;  %v2235_v7 = vld [vmem:[#allocation2 + $0x8c] ss:$16 sps:$4 sm:$0xff]  }
 0x161   :  { %v2238_v42 = vld [vmem:[#allocation2 + $0x28c] ss:$16 sps:$4 sm:$0xff]   ;;  %v2233_v8 = vld [vmem:[#allocation2 + $0x88] ss:$16 sps:$4 sm:$0xff]  }
 0x162   :  { %v462_v49 = vmul.bf16 %v458_v47, %v458_v47  ;;  %v464_v50 = vmul.bf16 %v460_v33, %v460_v33  ;;  %v461_v51 = vmul.bf16 %v457_v34, %v457_v34  ;;  %v463_v52 = vmul.bf16 %v459_v48, %v459_v48  ;;  %v2236_v43 = vld [vmem:[#allocation2 + $0x288] ss:$16 sps:$4 sm:$0xff]   ;;  %v2241_v19 = vld [vmem:[#allocation2 + $0x6c] ss:$16 sps:$4 sm:$0xff]  }
 0x163   :  { %v470_v15 = vmul.bf16 1056980736, %v458_v47  ;;  %v472_v20 = vmul.bf16 1056980736, %v460_v33  ;;  %v469_v24 = vmul.bf16 1056980736, %v457_v34 }
 0x164   :  { %v466_v53 = vmul.bf16 %v462_v49, %v458_v47  ;;  %v468_v54 = vmul.bf16 %v464_v50, %v460_v33  ;;  %v465_v55 = vmul.bf16 %v461_v51, %v457_v34  ;;  %v467_v56 = vmul.bf16 %v463_v52, %v459_v48  ;;  %v2244_v28 = vld [vmem:[#allocation2 + $0x26c] ss:$16 sps:$4 sm:$0xff]   ;;  %v2239_v32 = vld [vmem:[#allocation2 + $0x68] ss:$16 sps:$4 sm:$0xff]  }
 0x165   :  { %v471_v31 = vmul.bf16 1056980736, %v459_v48  ;;  %v2242_v44 = vld [vmem:[#allocation2 + $0x268] ss:$16 sps:$4 sm:$0xff]   ;;  %v2247_v45 = vld [vmem:[#allocation2 + $0x4c] ss:$16 sps:$4 sm:$0xff]  }
 0x166   :  { %v474_v59 = vmul.bf16 1027030327, %v466_v53  ;;  %v476_v63 = vmul.bf16 1027030327, %v468_v54  ;;  %v473_v0 = vmul.bf16 1027030327, %v465_v55 }
 0x167   :  { %v475_v57 = vmul.bf16 1027030327, %v467_v56  ;;  %v2250_v46 = vld [vmem:[#allocation2 + $0x24c] ss:$16 sps:$4 sm:$0xff]   ;;  %v2251_v49 = vld [vmem:[#allocation2 + $0x28] ss:$16 sps:$4 sm:$0xff]  }
 0x168   :  { %v478_v58 = vadd.bf16 %v474_v59, %v458_v47  ;;  %v480_v5 = vadd.bf16 %v476_v63, %v460_v33  ;;  %v477_v9 = vadd.bf16 %v473_v0, %v457_v34  ;;  %v2245_v47 = vld [vmem:[#allocation2 + $0x48] ss:$16 sps:$4 sm:$0xff]   ;;  %v2253_v34 = vld [vmem:[#allocation2 + $0x2c] ss:$16 sps:$4 sm:$0xff]  }
 0x169   :  { %v479_v62 = vadd.bf16 %v475_v57, %v459_v48  ;;  %v2248_v33 = vld [vmem:[#allocation2 + $0x248] ss:$16 sps:$4 sm:$0xff]   ;;  %v2256_v48 = vld [vmem:[#allocation2 + $0x22c] ss:$16 sps:$4 sm:$0xff]  }
 0x16a   :  { %v482_v2 = vmul.bf16 1061961548, %v478_v58  ;;  %v484_v3 = vmul.bf16 1061961548, %v480_v5  ;;  %v481_v10 = vmul.bf16 1061961548, %v477_v9 }
 0x16b   :  { %v483_v4 = vmul.bf16 1061961548, %v479_v62  ;;  %v2254_v50 = vld [vmem:[#allocation2 + $0x228] ss:$16 sps:$4 sm:$0xff]   ;;  %v2259_v51 = vld [vmem:[#allocation2 + $0xc] ss:$16 sps:$4 sm:$0xff]  }
 0x16c   :  { %2347 = vtanh.bf16 %v482_v2  ;;  %v2262_v52 = vld [vmem:[#allocation2 + $0x20c] ss:$16 sps:$4 sm:$0xff]   ;;  %v2257_v53 = vld [vmem:[#allocation2 + $0x8] ss:$16 sps:$4 sm:$0xff]  }
 0x16d   :  { %2349 = vtanh.bf16 %v484_v3  ;;  %v2260_v54 = vld [vmem:[#allocation2 + $0x208] ss:$16 sps:$4 sm:$0xff]   ;;  %v2265_v55 = vld [vmem:[#allocation2 + $0x1ec] ss:$16 sps:$4 sm:$0xff]  }
 0x16e   :  { %2351 = vtanh.bf16 %v481_v10  ;;  %v2268_v56 = vld [vmem:[#allocation2 + $0x3ec] ss:$16 sps:$4 sm:$0xff]   ;;  %v2263_v59 = vld [vmem:[#allocation2 + $0x1e8] ss:$16 sps:$4 sm:$0xff]  }
 0x16f   :  { %2353 = vtanh.bf16 %v483_v4  ;;  %v2266_v63 = vld [vmem:[#allocation2 + $0x3e8] ss:$16 sps:$4 sm:$0xff]   ;;  %v2271_v0 = vld [vmem:[#allocation2 + $0x1cc] ss:$16 sps:$4 sm:$0xff]  }
 0x170   :  { %v2274_v57 = vld [vmem:[#allocation2 + $0x3cc] ss:$16 sps:$4 sm:$0xff]   ;;  %v2269_v58 = vld [vmem:[#allocation2 + $0x1c8] ss:$16 sps:$4 sm:$0xff]  }
 0x171   :  { %v2272_v5 = vld [vmem:[#allocation2 + $0x3c8] ss:$16 sps:$4 sm:$0xff]   ;;  %v2277_v9 = vld [vmem:[#allocation2 + $0x1ac] ss:$16 sps:$4 sm:$0xff]  }
 0x172   :  { %v2280_v62 = vld [vmem:[#allocation2 + $0x3ac] ss:$16 sps:$4 sm:$0xff]   ;;  %v2275_v2 = vld [vmem:[#allocation2 + $0x1a8] ss:$16 sps:$4 sm:$0xff]  }
 0x173   :  { %v2278_v3 = vld [vmem:[#allocation2 + $0x3a8] ss:$16 sps:$4 sm:$0xff]   ;;  %v2283_v10 = vld [vmem:[#allocation2 + $0x18c] ss:$16 sps:$4 sm:$0xff]  }
 0x174   :  { %v2286_v4 = vld [vmem:[#allocation2 + $0x38c] ss:$16 sps:$4 sm:$0xff]  }
 0x17a   :  { %v2348_v11 = vpop.eup %2347 }
 0x17b   :  { %v2350_v12 = vpop.eup %2349  ;;  %v490_v16 = vadd.bf16 1065369472, %v2348_v11  ;;  %v2281_v11 = vld [vmem:[#allocation2 + $0x188] ss:$16 sps:$4 sm:$0xff]  }
 0x17c   :  { %v2352_v17 = vpop.eup %2351  ;;  %v492_v21 = vadd.bf16 1065369472, %v2350_v12  ;;  %v2284_v12 = vld [vmem:[#allocation2 + $0x388] ss:$16 sps:$4 sm:$0xff]  }
 0x17d   :  { %v2354_v22 = vpop.eup %2353  ;;  %v2590_v23 = vmul.bf16 %v490_v16, %v470_v15  ;;  %v489_v25 = vadd.bf16 1065369472, %v2352_v17  ;;  %v2289_v15 = vld [vmem:[#allocation2 + $0x16c] ss:$16 sps:$4 sm:$0xff]   ;;  %v2287_v17 = vld [vmem:[#allocation2 + $0x168] ss:$16 sps:$4 sm:$0xff]  }
 0x17e   :  { %v2592_v26 = vmul.bf16 %v492_v21, %v472_v20  ;;  %v491_v35 = vadd.bf16 1065369472, %v2354_v22  ;;  %v2292_v16 = vld [vmem:[#allocation2 + $0x36c] ss:$16 sps:$4 sm:$0xff]   ;;  %v2290_v20 = vld [vmem:[#allocation2 + $0x368] ss:$16 sps:$4 sm:$0xff]  }
 0x17f   :  { %1327 = vmatprep.mubr.bf16.mxu0 %v2590_v23  ;;  %v2595_v36 = vmul.bf16 %v489_v25, %v469_v24  ;;  %v2295_v21 = vld [vmem:[#allocation2 + $0x14c] ss:$16 sps:$4 sm:$0xff]   ;;  %v2293_v24 = vld [vmem:[#allocation2 + $0x148] ss:$16 sps:$4 sm:$0xff]  }
 0x180   :  { %1370 = vmatprep.mubr.bf16.mxu1 %v2592_v26  ;;  %v2598_v1 = vmul.bf16 %v491_v35, %v471_v31  ;;  %v2298_v22 = vld [vmem:[#allocation2 + $0x34c] ss:$16 sps:$4 sm:$0xff]   ;;  %v2296_v25 = vld [vmem:[#allocation2 + $0x348] ss:$16 sps:$4 sm:$0xff]  }
 0x181   :  { %1328 = vmatmul.mubr.bf16.vlgmr.msra.gmra.mxu0 %v2595_v36  ;;  %v2304_v31 = vld [vmem:[#allocation2 + $0x32c] ss:$16 sps:$4 sm:$0xff]   ;;  %v2299_v35 = vld [vmem:[#allocation2 + $0x128] ss:$16 sps:$4 sm:$0xff]  }
 0x182   :  { %1371 = vmatmul.mubr.bf16.vlgmr.msra.gmra.mxu1 %v2598_v1  ;;  %1382 = vmatpush1.bf16.msra.mxu0 %v2215_v27  ;;  %v2301_v27 = vld [vmem:[#allocation2 + $0x12c] ss:$16 sps:$4 sm:$0xff]  }
 0x183   :  { %1425 = vmatpush1.bf16.msra.mxu1 %v2218_v60  ;;  %1413 = vmatprep.mubr.bf16.mxu0 %v2590_v23  ;;  %v2302_v60 = vld [vmem:[#allocation2 + $0x328] ss:$16 sps:$4 sm:$0xff]  }
 0x184   :  { %1456 = vmatprep.mubr.bf16.mxu1 %v2592_v26  ;;  %1383 = vmatprep.subr.bf16.mxu0 %v2223_v37  ;;  %v2307_v37 = vld [vmem:[#allocation2 + $0x10c] ss:$16 sps:$4 sm:$0xff]  }
 0x185   :  { %1426 = vmatprep.subr.bf16.mxu1 %v2226_v61  ;;  %v2310_v61 = vld [vmem:[#allocation2 + $0x30c] ss:$16 sps:$4 sm:$0xff]  }
 0x186   :  { %1384 = vmatpush1.bf16.msra.mxu0 %v2221_v38  ;;  %v2305_v38 = vld [vmem:[#allocation2 + $0x108] ss:$16 sps:$4 sm:$0xff]  }
 0x187   :  { %1427 = vmatpush1.bf16.msra.mxu1 %v2224_v13  ;;  %1385 = vmatprep.subr.bf16.mxu0 %v2229_v39  ;;  %v2308_v13 = vld [vmem:[#allocation2 + $0x308] ss:$16 sps:$4 sm:$0xff]  }
 0x188   :  { %1428 = vmatprep.subr.bf16.mxu1 %v2232_v40  ;;  %v2311_v39 = vld [vmem:[#allocation4 + $0x78] sm:$0xff]  }
 0x189   :  { %v2312_v40 = vld [vmem:[#allocation4 + $0x38] sm:$0xff]  }
 0x18a   :  { %1386 = vmatpush1.bf16.msra.mxu0 %v2227_v6  ;;  %v2313_v6 = vld [vmem:[#allocation4 + $0x70] sm:$0xff]  }
 0x18b   :  { %1429 = vmatpush1.bf16.msra.mxu1 %v2230_v41  ;;  %1387 = vmatprep.subr.bf16.mxu0 %v2235_v7  ;;  %v2314_v41 = vld [vmem:[#allocation4 + $0x30] sm:$0xff]   ;;  %v2315_v7 = vld [vmem:[#allocation4 + $0x68] sm:$0xff]  }
 0x18c   :  { %1430 = vmatprep.subr.bf16.mxu1 %v2238_v42  ;;  %v2316_v42 = vld [vmem:[#allocation4 + $0x28] sm:$0xff]  }
 0x18e   :  { %1388 = vmatpush1.bf16.msra.mxu0 %v2233_v8  ;;  %v2317_v8 = vld [vmem:[#allocation4 + $0x60] sm:$0xff]  }
 0x18f   :  { %1431 = vmatpush1.bf16.msra.mxu1 %v2236_v43  ;;  %1389 = vmatprep.subr.bf16.mxu0 %v2241_v19  ;;  %v2318_v43 = vld [vmem:[#allocation4 + $0x20] sm:$0xff]   ;;  %v2319_v19 = vld [vmem:[#allocation4 + $0x58] sm:$0xff]  }
 0x190   :  { %1432 = vmatprep.subr.bf16.mxu1 %v2244_v28  ;;  %v2320_v28 = vld [vmem:[#allocation4 + $0x18] sm:$0xff]  }
 0x192   :  { %1390 = vmatpush1.bf16.msra.mxu0 %v2239_v32  ;;  %v2321_v32 = vld [vmem:[#allocation4 + $0x50] sm:$0xff]  }
 0x193   :  { %1433 = vmatpush1.bf16.msra.mxu1 %v2242_v44  ;;  %1391 = vmatprep.subr.bf16.mxu0 %v2247_v45  ;;  %v2322_v44 = vld [vmem:[#allocation4 + $0x10] sm:$0xff]   ;;  %v2323_v45 = vld [vmem:[#allocation4 + $0x48] sm:$0xff]  }
 0x194   :  { %1434 = vmatprep.subr.bf16.mxu1 %v2250_v46  ;;  %v2324_v46 = vld [vmem:[#allocation4 + $0x8] sm:$0xff]  }
 0x196   :  { %1392 = vmatpush1.bf16.msra.mxu0 %v2245_v47  ;;  %v2325_v47 = vld [vmem:[#allocation4 + $0x40] sm:$0xff]  }
 0x197   :  { %1435 = vmatpush1.bf16.msra.mxu1 %v2248_v33  ;;  %1393 = vmatprep.subr.bf16.mxu0 %v2253_v34  ;;  %v2326_v33 = vld [vmem:[#allocation4] sm:$0xff]   ;;  %v2327_v34 = vld [vmem:[#allocation4 + $0xf8] sm:$0xff]  }
 0x198   :  { %1436 = vmatprep.subr.bf16.mxu1 %v2256_v48  ;;  %v2328_v48 = vld [vmem:[#allocation4 + $0xb8] sm:$0xff]  }
 0x19a   :  { %1394 = vmatpush1.bf16.msra.mxu0 %v2251_v49  ;;  %v2329_v49 = vld [vmem:[#allocation4 + $0xf0] sm:$0xff]  }
 0x19b   :  { %1437 = vmatpush1.bf16.msra.mxu1 %v2254_v50  ;;  %1395 = vmatprep.subr.bf16.mxu0 %v2259_v51  ;;  %v2330_v50 = vld [vmem:[#allocation4 + $0xb0] sm:$0xff]   ;;  %v2331_v51 = vld [vmem:[#allocation4 + $0xe8] sm:$0xff]  }
 0x19c   :  { %1438 = vmatprep.subr.bf16.mxu1 %v2262_v52  ;;  %v2332_v52 = vld [vmem:[#allocation4 + $0xa8] sm:$0xff]  }
 0x19e   :  { %1396 = vmatpush1.bf16.msra.mxu0 %v2257_v53  ;;  %v2333_v53 = vld [vmem:[#allocation4 + $0xe0] sm:$0xff]  }
 0x19f   :  { %1439 = vmatpush1.bf16.msra.mxu1 %v2260_v54  ;;  %1397 = vmatprep.subr.bf16.mxu0 %v2265_v55  ;;  %v2334_v54 = vld [vmem:[#allocation4 + $0xa0] sm:$0xff]   ;;  %v2335_v55 = vld [vmem:[#allocation4 + $0xd8] sm:$0xff]  }
 0x1a0   :  { %1440 = vmatprep.subr.bf16.mxu1 %v2268_v56  ;;  %v2336_v56 = vld [vmem:[#allocation4 + $0x98] sm:$0xff]  }
 0x1a2   :  { %1398 = vmatpush2.bf16.msra.mxu0 %v2263_v59  ;;  %v2337_v59 = vld [vmem:[#allocation4 + $0xd0] sm:$0xff]  }
 0x1a3   :  { %1441 = vmatpush2.bf16.msra.mxu1 %v2266_v63  ;;  %1399 = vmatprep.subr.bf16.mxu0 %v2271_v0  ;;  %v2338_v63 = vld [vmem:[#allocation4 + $0x90] sm:$0xff]   ;;  %v2339_v0 = vld [vmem:[#allocation4 + $0xc8] sm:$0xff]  }
 0x1a4   :  { %1442 = vmatprep.subr.bf16.mxu1 %v2274_v57  ;;  %v2340_v57 = vld [vmem:[#allocation4 + $0x88] sm:$0xff]  }
 0x1a6   :  { %1400 = vmatpush2.bf16.msra.mxu0 %v2269_v58  ;;  %v2341_v58 = vld [vmem:[#allocation4 + $0xc0] sm:$0xff]  }
 0x1a7   :  { %1443 = vmatpush2.bf16.msra.mxu1 %v2272_v5  ;;  %1401 = vmatprep.subr.bf16.mxu0 %v2277_v9  ;;  %v2342_v5 = vld [vmem:[#allocation4 + $0x80] sm:$0xff]  }
 0x1a8   :  { %1444 = vmatprep.subr.bf16.mxu1 %v2280_v62  ;;  %v633_v9 = vld [vmem:[%s2636_s6] sm:$0xf] }
 0x1a9   :  { %v638_v62 = vrot.slane %v633_v9, %v2491_v18 }
 0x1aa   :  { %1402 = vmatpush2.bf16.msra.mxu0 %v2275_v2 }
 0x1ab   :  { %1445 = vmatpush2.bf16.msra.mxu1 %v2278_v3  ;;  %1403 = vmatprep.subr.bf16.mxu0 %v2283_v10  ;;  %v642_v10 = vrot.slane %v633_v9, %v2483_v14 }
 0x1ac   :  { %1446 = vmatprep.subr.bf16.mxu1 %v2286_v4 }
 0x1ae   :  { %1404 = vmatpush2.bf16.msra.mxu0 %v2281_v11 }
 0x1af   :  { %1447 = vmatpush2.bf16.msra.mxu1 %v2284_v12  ;;  %1405 = vmatprep.subr.bf16.mxu0 %v2289_v15 }
 0x1b0   :  { %1448 = vmatprep.subr.bf16.mxu1 %v2292_v16 }
 0x1b2   :  { %1406 = vmatpush2.bf16.msra.mxu0 %v2287_v17 }
 0x1b3   :  { %1449 = vmatpush2.bf16.msra.mxu1 %v2290_v20  ;;  %1407 = vmatprep.subr.bf16.mxu0 %v2295_v21 }
 0x1b4   :  { %1450 = vmatprep.subr.bf16.mxu1 %v2298_v22 }
 0x1b6   :  { %1408 = vmatpush2.bf16.msra.mxu0 %v2293_v24 }
 0x1b7   :  { %1451 = vmatpush2.bf16.msra.mxu1 %v2296_v25  ;;  %1409 = vmatprep.subr.bf16.mxu0 %v2301_v27 }
 0x1b8   :  { %1452 = vmatprep.subr.bf16.mxu1 %v2304_v31 }
 0x1ba   :  { %1410 = vmatpush2.bf16.msra.mxu0 %v2299_v35 }
 0x1bb   :  { %1453 = vmatpush2.bf16.msra.mxu1 %v2302_v60  ;;  %1411 = vmatprep.subr.bf16.mxu0 %v2307_v37 }
 0x1bc   :  { %1454 = vmatprep.subr.bf16.mxu1 %v2310_v61 }
 0x1be   :  { %1412 = vmatpush2.bf16.msra.mxu0 %v2305_v38 }
 0x1bf   :  { %1455 = vmatpush2.bf16.msra.mxu1 %v2308_v13  ;;  %2059 = vmatprep.subr.bf16.mxu0 %v2311_v39 }
 0x1c0   :  { %2081 = vmatprep.subr.bf16.mxu1 %v2327_v34  ;;  %v501_v34 = vunpack.c.h.bf16 %v2595_v36 }
 0x1c1   :  { %1414 = vmatmul.mubr.bf16.vlgmr.msra.gmra.mxu0 %v2595_v36 }
 0x1c2   :  { %1457 = vmatmul.mubr.bf16.vlgmr.msra.gmra.mxu1 %v2598_v1  ;;  %2060 = vmatpush3.bf16.msra.mxu0 %v2312_v40 }
 0x1c3   :  { %2061 = vmatprep.subr.bf16.mxu0 %v2313_v6  ;;  %2082 = vmatpush3.bf16.msra.mxu1 %v2328_v48  ;;  %v498_v48 = vunpack.c.l.bf16 %v2590_v23 }
 0x1c4   :  { %2083 = vmatprep.subr.bf16.mxu1 %v2329_v49  ;;  %v502_v49 = vunpack.c.h.bf16 %v2590_v23 }
 0x1c6   :  { %2062 = vmatpush3.bf16.msra.mxu0 %v2314_v41 }
 0x1c7   :  { %2063 = vmatprep.subr.bf16.mxu0 %v2315_v7  ;;  %2084 = vmatpush3.bf16.msra.mxu1 %v2330_v50 }
 0x1c8   :  { %2085 = vmatprep.subr.bf16.mxu1 %v2331_v51 }
 0x1ca   :  { %2064 = vmatpush3.bf16.msra.mxu0 %v2316_v42 }
 0x1cb   :  { %2065 = vmatprep.subr.bf16.mxu0 %v2317_v8  ;;  %2086 = vmatpush3.bf16.msra.mxu1 %v2332_v52 }
 0x1cc   :  { %2087 = vmatprep.subr.bf16.mxu1 %v2333_v53 }
 0x1ce   :  { %2066 = vmatpush3.bf16.msra.mxu0 %v2318_v43 }
 0x1cf   :  { %2067 = vmatprep.subr.bf16.mxu0 %v2319_v19  ;;  %2088 = vmatpush3.bf16.msra.mxu1 %v2334_v54 }
 0x1d0   :  { %2089 = vmatprep.subr.bf16.mxu1 %v2335_v55 }
 0x1d2   :  { %2068 = vmatpush3.bf16.msra.mxu0 %v2320_v28 }
 0x1d3   :  { %2069 = vmatprep.subr.bf16.mxu0 %v2321_v32  ;;  %2090 = vmatpush3.bf16.msra.mxu1 %v2336_v56 }
 0x1d4   :  { %2091 = vmatprep.subr.bf16.mxu1 %v2337_v59 }
 0x1d6   :  { %2070 = vmatpush3.bf16.msra.mxu0 %v2322_v44 }
 0x1d7   :  { %2071 = vmatprep.subr.bf16.mxu0 %v2323_v45  ;;  %2092 = vmatpush3.bf16.msra.mxu1 %v2338_v63  ;;  %v646_v63 = vrot.slane %v633_v9, %v2498_v29 }
 0x1d8   :  { %2093 = vmatprep.subr.bf16.mxu1 %v2339_v0 }
 0x1da   :  { %2072 = vmatpush3.bf16.msra.mxu0 %v2324_v46 }
 0x1db   :  { %2073 = vmatprep.subr.bf16.mxu0 %v2325_v47  ;;  %2094 = vmatpush3.bf16.msra.mxu1 %v2340_v57 }
 0x1dc   :  { %2095 = vmatprep.subr.bf16.mxu1 %v2341_v58 }
 0x1de   :  { %2074 = vmatpush3.bf16.msra.mxu0 %v2326_v33  ;;  %v497_v33 = vunpack.c.l.bf16 %v2595_v36  ;;  %v650_v36 = vrot.slane %v633_v9, %v2500_v30 }
 0x1df   :  { %2096 = vmatpush3.bf16.msra.mxu1 %v2342_v5 }
 0x241   :  { %v1329_v2 = vpop.f32.mrf.mxu0 }
 0x242   :  { %v1372_v3 = vpop.f32.mrf.mxu1  ;;  %v1330_v11 = vadd.f32 %v1329_v2, %v638_v62 }
 0x243   :  { %v1331_v4 = vpop.f32.mrf.mxu0 }
 0x244   :  { %v1374_v12 = vpop.f32.mrf.mxu1  ;;  %v1332_v16 = vadd.f32 %v1331_v4, %v642_v10  ;;  %v1373_v22 = vadd.f32 %v1372_v3, %v1330_v11 }
 0x245   :  { %v1333_v15 = vpop.f32.mrf.mxu0 }
 0x246   :  { %v1334_v17 = vadd.f32 %v1333_v15, %v638_v62  ;;  %v1376_v20 = vpop.f32.mrf.mxu1  ;;  %v1375_v31 = vadd.f32 %v1374_v12, %v1332_v16 }
 0x247   :  { %v1335_v21 = vpop.f32.mrf.mxu0 }
 0x248   :  { %v1377_v24 = vadd.f32 %v1376_v20, %v1334_v17  ;;  %v1336_v25 = vadd.f32 %v1335_v21, %v642_v10  ;;  %v1378_v27 = vpop.f32.mrf.mxu1 }
 0x24a   :  { %v1467_v35 = vpack.c.bf16 %v1377_v24, %v1373_v22  ;;  %v1379_v60 = vadd.f32 %v1378_v27, %v1336_v25 }
 0x24c   :  { %v1471_v18 = vmul.bf16 %v1467_v35, %v1467_v35  ;;  %v1468_v37 = vpack.c.bf16 %v1379_v60, %v1375_v31  ;;  %v1479_v8 = vmul.bf16 1056980736, %v1467_v35 }
 0x24e   :  { %v1475_v61 = vmul.bf16 %v1471_v18, %v1467_v35  ;;  %v1472_v38 = vmul.bf16 %v1468_v37, %v1468_v37  ;;  %v1480_v32 = vmul.bf16 1056980736, %v1468_v37 }
 0x250   :  { %v1483_v14 = vmul.bf16 1027030327, %v1475_v61  ;;  %v1476_v13 = vmul.bf16 %v1472_v38, %v1468_v37 }
 0x252   :  { %v1487_v39 = vadd.bf16 %v1483_v14, %v1467_v35  ;;  %v1484_v40 = vmul.bf16 1027030327, %v1476_v13 }
 0x254   :  { %v1491_v6 = vmul.bf16 1061961548, %v1487_v39  ;;  %v1488_v41 = vadd.bf16 %v1484_v40, %v1468_v37 }
 0x256   :  { %2355 = vtanh.bf16 %v1491_v6  ;;  %v1492_v7 = vmul.bf16 1061961548, %v1488_v41 }
 0x258   :  { %2357 = vtanh.bf16 %v1492_v7 }
 0x264   :  { %v2356_v42 = vpop.eup %2355 }
 0x265   :  { %v1499_v43 = vadd.bf16 1065369472, %v2356_v42  ;;  %v499_v42 = vunpack.c.l.bf16 %v2598_v1 }
 0x266   :  { %v2358_v19 = vpop.eup %2357 }
 0x267   :  { %v1503_v28 = vmul.bf16 %v1499_v43, %v1479_v8  ;;  %v1500_v44 = vadd.bf16 1065369472, %v2358_v19  ;;  %v503_v8 = vunpack.c.h.bf16 %v2598_v1  ;;  %v500_v43 = vunpack.c.l.bf16 %v2592_v26 }
 0x268   :  { %v504_v19 = vunpack.c.h.bf16 %v2592_v26  ;;  %v2023_v26 = vld [vmem:[%s2638_s8] ss:$0 sm:$0xff] }
 0x269   :  { %v1504_v45 = vmul.bf16 %v1500_v44, %v1480_v32  ;;  %v1507_v46 = vunpack.c.l.bf16 %v1503_v28  ;;  %v1511_v47 = vunpack.c.h.bf16 %v1503_v28 }
 0x26b   :  { %v1508_v50 = vunpack.c.l.bf16 %v1504_v45  ;;  %v1512_v51 = vunpack.c.h.bf16 %v1504_v45  ;;  %v1515_v52 = vadd.f32 %v1507_v46, %v497_v33  ;;  %v1519_v53 = vadd.f32 %v1511_v47, %v501_v34 }
 0x26d   :  { %v1516_v54 = vadd.f32 %v1508_v50, %v498_v48  ;;  %v1520_v55 = vadd.f32 %v1512_v51, %v502_v49  ;;  %v1523_v59 = vpack.c.bf16 %v1519_v53, %v1515_v52 }
 0x26f   :  { %v1524_v56 = vpack.c.bf16 %v1520_v55, %v1516_v54 }
 0x271   :  { %1822 = vmatprep.mubr.bf16.mxu0 %v1524_v56 }
 0x272   :  { %1823 = vmatmul.mubr.bf16.vlgmr.msra.gmra.mxu0 %v1523_v59 }
 0x281   :  { %v1415_v0 = vpop.f32.mrf.mxu0 }
 0x282   :  { %v1458_v57 = vpop.f32.mrf.mxu1  ;;  %v1416_v5 = vadd.f32 %v1415_v0, %v646_v63 }
 0x283   :  { %v1417_v58 = vpop.f32.mrf.mxu0 }
 0x284   :  { %v1460_v62 = vpop.f32.mrf.mxu1  ;;  %v1418_v2 = vadd.f32 %v1417_v58, %v650_v36  ;;  %v1459_v11 = vadd.f32 %v1458_v57, %v1416_v5 }
 0x285   :  { %v1419_v23 = vpop.f32.mrf.mxu0 }
 0x286   :  { %v1420_v3 = vadd.f32 %v1419_v23, %v646_v63  ;;  %v1462_v10 = vpop.f32.mrf.mxu1  ;;  %v1461_v17 = vadd.f32 %v1460_v62, %v1418_v2 }
 0x287   :  { %v1421_v4 = vpop.f32.mrf.mxu0 }
 0x288   :  { %v1463_v12 = vadd.f32 %v1462_v10, %v1420_v3  ;;  %v1422_v15 = vadd.f32 %v1421_v4, %v650_v36  ;;  %v1464_v16 = vpop.f32.mrf.mxu1 }
 0x28a   :  { %v1469_v20 = vpack.c.bf16 %v1463_v12, %v1459_v11  ;;  %v1465_v21 = vadd.f32 %v1464_v16, %v1422_v15 }
 0x28c   :  { %v1473_v29 = vmul.bf16 %v1469_v20, %v1469_v20  ;;  %v1470_v22 = vpack.c.bf16 %v1465_v21, %v1461_v17  ;;  %v1481_v61 = vmul.bf16 1056980736, %v1469_v20 }
 0x28e   :  { %v1477_v24 = vmul.bf16 %v1473_v29, %v1469_v20  ;;  %v1474_v25 = vmul.bf16 %v1470_v22, %v1470_v22  ;;  %v1482_v39 = vmul.bf16 1056980736, %v1470_v22 }
 0x290   :  { %v1485_v30 = vmul.bf16 1027030327, %v1477_v24  ;;  %v1478_v9 = vmul.bf16 %v1474_v25, %v1470_v22 }
 0x292   :  { %v1489_v27 = vadd.bf16 %v1485_v30, %v1469_v20  ;;  %v1486_v31 = vmul.bf16 1027030327, %v1478_v9 }
 0x294   :  { %v1493_v35 = vmul.bf16 1061961548, %v1489_v27  ;;  %v1490_v60 = vadd.bf16 %v1486_v31, %v1470_v22 }
 0x296   :  { %2359 = vtanh.bf16 %v1493_v35  ;;  %v1494_v18 = vmul.bf16 1061961548, %v1490_v60 }
 0x298   :  { %2361 = vtanh.bf16 %v1494_v18 }
 0x2a4   :  { %v2360_v37 = vpop.eup %2359 }
 0x2a5   :  { %v1501_v38 = vadd.bf16 1065369472, %v2360_v37 }
 0x2a6   :  { %v2362_v14 = vpop.eup %2361 }
 0x2a7   :  { %v1505_v13 = vmul.bf16 %v1501_v38, %v1481_v61  ;;  %v1502_v40 = vadd.bf16 1065369472, %v2362_v14 }
 0x2a9   :  { %v1506_v6 = vmul.bf16 %v1502_v40, %v1482_v39  ;;  %v1509_v41 = vunpack.c.l.bf16 %v1505_v13  ;;  %v1513_v7 = vunpack.c.h.bf16 %v1505_v13 }
 0x2ab   :  { %v1510_v28 = vunpack.c.l.bf16 %v1506_v6  ;;  %v1514_v32 = vunpack.c.h.bf16 %v1506_v6  ;;  %v1517_v44 = vadd.f32 %v1509_v41, %v499_v42  ;;  %v1521_v45 = vadd.f32 %v1513_v7, %v503_v8 }
 0x2ad   :  { %v1518_v46 = vadd.f32 %v1510_v28, %v500_v43  ;;  %v1522_v47 = vadd.f32 %v1514_v32, %v504_v19  ;;  %v1525_v34 = vpack.c.bf16 %v1521_v45, %v1517_v44 }
 0x2af   :  { %v1526_v33 = vpack.c.bf16 %v1522_v47, %v1518_v46 }
 0x2b1   :  { %1863 = vmatprep.mubr.bf16.mxu1 %v1526_v33 }
 0x2b2   :  { %1864 = vmatmul.mubr.bf16.vlgmr.msra.gmra.mxu1 %v1525_v34 }
 0x332   :  { %v2075_v48 = vpop.f32.mrf.mxu0 }
 0x334   :  { %v2076_v49 = vpop.f32.mrf.mxu0 }
 0x335   :  { %v2077_v53 = vadd.f32 %v2076_v49, %v2075_v48 }
 0x336   :  { %v2078_v50 = vpop.f32.mrf.mxu0 }
 0x337   :  { %v1825_v63 = vadd.f32 %v2077_v53, %v2023_v26 }
 0x338   :  { %v2079_v51 = vpop.f32.mrf.mxu0 }
 0x339   :  { %v2080_v54 = vadd.f32 %v2079_v51, %v2078_v50 }
 0x33b   :  { %v1828_v0 = vadd.f32 %v2080_v54, %v2023_v26 }
 0x372   :  { %v2097_v52 = vpop.f32.mrf.mxu1 }
 0x374   :  { %v2098_v1 = vpop.f32.mrf.mxu1 }
 0x375   :  { %v2099_v56 = vadd.f32 %v2098_v1, %v2097_v52 }
 0x376   :  { %v2100_v55 = vpop.f32.mrf.mxu1 }
 0x377   :  { %v1866_v36 = vadd.f32 %v2099_v56, %v1825_v63 }
 0x378   :  { %v2101_v59 = vpop.f32.mrf.mxu1 }
 0x379   :  { %v2102_v57 = vadd.f32 %v2101_v59, %v2100_v55 }
 0x37b   :  { %v1869_v58 = vadd.f32 %v2102_v57, %v1828_v0 }
 0x37d   :  { %v1872_v5 = vpack.c.bf16 %v1869_v58, %v1866_v36 }
 0x37f   :  { %v2056_v62 = vmul.bf16 3216621497, %v1872_v5 }
 0x381   :  { %2363 = vpow.bf16 %v2056_v62 }
 0x38f   :  { %v2364_v23 = vpop.eup %2363 }
 0x390   :  { %v1877_v2 = vadd.bf16 1065369472, %v2364_v23 }
 0x392   :  { %2365 = vrcp.bf16 %v1877_v2 }
 0x3a0   :  { %v2366_v3 = vpop.eup %2365 }
 0x3a1   :  { %v1879_v10 = vmul.bf16 1065369472, %v2366_v3 }
 0x3a3   :  { %v2057_v4 = vcombine.low %v1879_v10, %v1879_v10  ;;  %v2058_v11 = vcombine.high %v1879_v10, %v1879_v10 }
 0x3a5   :  { %1887 = vst [vmem:[%s2639_s9] sm:$0xf] %v2057_v4  ;;  %1888 = vst [vmem:[%s2639_s9 + $0x4] sm:$0xf] %v2058_v11 }
 0x3a6   :  { %1893 = vsyncpa [#allocation3], 1 }
 0x3a7   :  { %1894 = vsyncpa [#allocation5], 1 }

</bundles_post_ra>
